<compile_context>
chip_gen: v6e
topology: v6e:2x2x1
jax: 0.10.0
libtpu: 0.0.40
codegen_flags: <defaults>
</compile_context>

<pallas_src>
import jax
import jax.numpy as jnp
from jax.experimental import pallas as pl
from jax.experimental.pallas import tpu as pltpu


def se_gate_kernel(v_ref, w_ref, b_ref, x_ref, o_ref):
    # v: [Cin, 1]  f32  squeeze input (x856); converted to bf16 in-register
    # w: [Cb, Cin] bf16 pre-prepared 1x1-conv weight block (native [Cout, Cin])
    # b: [Cb, 1]   f32  conv bias block
    # x: [Cb, HW]  f32  main activation block ([C, H*W] slab of NCHW, N == 1)
    # o: [Cb, HW]
    v = v_ref[...].astype(jnp.bfloat16)                      # 1 vreg VALU convert
    gate = jnp.dot(w_ref[...], v, preferred_element_type=jnp.float32)   # [Cb, 1]
    gate = gate + b_ref[...]
    # Exact sigmoid via a single EUP op per vreg:
    #   sigmoid(z) = 0.5 * (1 + tanh(z / 2))
    # (half the EUP pushes of exp + reciprocal, and no approx reciprocal).
    gate = 0.5 * jnp.tanh(0.5 * gate) + 0.5                  # [Cb, 1]
    o_ref[...] = (x_ref[...] * gate).astype(o_ref.dtype)


def _pick_num_blocks(C: int) -> int:
    # 4 blocks over Cout:
    #  * v5e/v6e (1 TC): 4 grid steps let Pallas pipeline input-DMA, the
    #    sigmoid+multiply epilogue, and the output writeback.
    #  * v7x (2 TCs): "parallel" semantics shard the 4 blocks 2-per-core,
    #    giving each core one step of pipelining.
    for nb in (4, 2, 1):
        if C % nb == 0 and (C // nb) % 8 == 0:
            return nb
    return 1


def prepare_conv_params(weight, bias):
    """One-time (init-time) parameter prep for the fused SE-gate kernel.

    Hoisted out of the per-call wrapper so the f32->bf16 weight cast is not an
    extra per-call HBM pass: the kernel then reads the weight once, as bf16.

    weight: [Cout, Cin, 1, 1] f32 -> [Cout, Cin] bf16
    bias:   [Cout]            f32 -> [Cout, 1]   f32
    """
    Cout, Cin = weight.shape[0], weight.shape[1]
    w2d = weight.reshape(Cout, Cin).astype(jnp.bfloat16)
    b2d = bias.reshape(Cout, 1).astype(jnp.float32)
    return w2d, b2d


def se_conv_sigmoid_mul(x853, x856, w2d, b2d):
    """SE gate: sigmoid(conv1x1(x856)) * x853, fused in one Pallas kernel.

    x853: [1, Cout, H, W] f32   main activation
    x856: [1, Cin, 1, 1]  f32   squeezed activation
    w2d:  [Cout, Cin]     bf16  pre-prepared conv weight (prepare_conv_params)
    b2d:  [Cout, 1]       f32   pre-prepared conv bias
    returns [1, Cout, H, W]
    """
    N, C, H, W = x853.shape
    assert N == 1, "kernel written for batch=1 (as in the reference module)"
    Cin = x856.shape[1]
    assert w2d.shape == (C, Cin) and b2d.shape == (C, 1)
    HW = H * W

    num_blocks = _pick_num_blocks(C)
    Cb = C // num_blocks

    # NCHW with N == 1 is already a [C, H*W] slab: all reshapes below are free
    # metadata changes (no transposes, no extra HBM passes).
    x = x853.reshape(C, HW)                 # [C, HW]  f32
    v = x856.reshape(Cin, 1)                # [Cin, 1] f32 (bf16 convert in-kernel)

    cost = pl.CostEstimate(
        flops=2 * C * Cin + C + C * HW,
        transcendentals=C,
        bytes_accessed=C * Cin * 2 + Cin * 4 + C * 4 + 2 * C * HW * 4,
    )

    # NOTE: input_output_aliases={3: 0} would gate x853 in place, but it only
    # pays off when the caller donates x853 (otherwise XLA inserts a defensive
    # copy), so it is intentionally left off here.
    out = pl.pallas_call(
        se_gate_kernel,
        out_shape=jax.ShapeDtypeStruct((C, HW), x853.dtype),
        grid=(num_blocks,),
        in_specs=[
            pl.BlockSpec((Cin, 1), lambda i: (0, 0)),    # v: same tiny block each step
            pl.BlockSpec((Cb, Cin), lambda i: (i, 0)),   # w
            pl.BlockSpec((Cb, 1), lambda i: (i, 0)),     # b
            pl.BlockSpec((Cb, HW), lambda i: (i, 0)),    # x
        ],
        out_specs=pl.BlockSpec((Cb, HW), lambda i: (i, 0)),
        compiler_params=pltpu.CompilerParams(
            dimension_semantics=("parallel",)),
        cost_estimate=cost,
    )(v, w2d, b2d, x)

    return out.reshape(N, C, H, W)


if __name__ == "__main__":
    key = jax.random.PRNGKey(0)
    k1, k2, k3, k4 = jax.random.split(key, 4)

    Cin, Cout, H, W = 96, 2304, 7, 7

    x853 = jax.random.normal(k1, (1, Cout, H, W), dtype=jnp.float32)
    x856 = jax.random.normal(k2, (1, Cin, 1, 1), dtype=jnp.float32)
    # Deterministic synthetic parameters (Conv2d(96, 2304, kernel_size=1)).
    weight = jax.random.normal(k3, (Cout, Cin, 1, 1), dtype=jnp.float32) * 0.05
    bias = jax.random.normal(k4, (Cout,), dtype=jnp.float32) * 0.05

    # One-time parameter preparation (model init) -- NOT on the per-call path.
    w2d, b2d = jax.block_until_ready(prepare_conv_params(weight, bias))

    fn = jax.jit(se_conv_sigmoid_mul)
    out = jax.block_until_ready(fn(x853, x856, w2d, b2d))

    # Pure-JAX f32 reference of the module semantics.
    gate_ref = jax.nn.sigmoid(
        jnp.einsum("oi,i->o", weight.reshape(Cout, Cin), x856.reshape(Cin)) + bias
    ).reshape(1, Cout, 1, 1)
    ref = gate_ref * x853

    assert out.shape == (1, Cout, H, W)
    # bf16 conv weight -> loosened tolerance vs the pure-f32 reference.
    assert jnp.allclose(out, ref, atol=2e-2, rtol=2e-2), float(
        jnp.max(jnp.abs(out - ref)))

    print("KERNEL_OK")
</pallas_src>

<mosaic_0001>
module attributes {stable_mosaic.version = 11 : i64} {
  func.func @se_gate_kernel(%arg0: i32, %arg1: memref<96x1xf32, #tpu.memory_space<vmem>>, %arg2: memref<576x96xbf16, #tpu.memory_space<vmem>>, %arg3: memref<576x1xf32, #tpu.memory_space<vmem>>, %arg4: memref<576x49xf32, #tpu.memory_space<vmem>>, %arg5: memref<576x49xf32, #tpu.memory_space<vmem>>) attributes {dimension_semantics = [#tpu.dimension_semantics<parallel>], iteration_bounds = array<i64: 4>, scalar_prefetch = 0 : i64, scratch_operands = 0 : i64, tpu.core_type = #tpu.core_type<tc>, window_params = [{pipeline_mode = #tpu.pipeline_mode<synchronous>, transform_indices = @transform_0, window_bounds = array<i64: 96, 1>}, {transform_indices = @transform_1, window_bounds = array<i64: 576, 96>}, {transform_indices = @transform_2, window_bounds = array<i64: 576, 1>}, {transform_indices = @transform_3, window_bounds = array<i64: 576, 49>}, {transform_indices = @transform_4, window_bounds = array<i64: 576, 49>}]} {
    %c0 = arith.constant 0 : index
    %c0_0 = arith.constant 0 : index
    %0 = vector.load %arg1[%c0, %c0_0] : memref<96x1xf32, #tpu.memory_space<vmem>>, vector<96x1xf32>
    %1 = arith.truncf %0 : vector<96x1xf32> to vector<96x1xbf16>
    %c0_1 = arith.constant 0 : index
    %c0_2 = arith.constant 0 : index
    %2 = vector.load %arg2[%c0_1, %c0_2] : memref<576x96xbf16, #tpu.memory_space<vmem>>, vector<576x96xbf16>
    %cst = arith.constant dense<0.000000e+00> : vector<576x1xf32>
    %3 = tpu.matmul %2, %1, %cst {dimension_numbers = #tpu.dot_dimension_numbers<[1], [0], [0], [1], [0, 0, 1, 1], [], []>} : vector<576x96xbf16>, vector<96x1xbf16>, vector<576x1xf32> -> vector<576x1xf32>
    %c0_3 = arith.constant 0 : index
    %c0_4 = arith.constant 0 : index
    %4 = vector.load %arg3[%c0_3, %c0_4] : memref<576x1xf32, #tpu.memory_space<vmem>>, vector<576x1xf32>
    %5 = arith.addf %3, %4 : vector<576x1xf32>
    %cst_5 = arith.constant 5.000000e-01 : f32
    %6 = vector.broadcast %cst_5 : f32 to vector<576x1xf32>
    %7 = arith.mulf %6, %5 : vector<576x1xf32>
    %8 = math.tanh %7 : vector<576x1xf32>
    %cst_6 = arith.constant 5.000000e-01 : f32
    %9 = vector.broadcast %cst_6 : f32 to vector<576x1xf32>
    %10 = arith.mulf %9, %8 : vector<576x1xf32>
    %cst_7 = arith.constant 5.000000e-01 : f32
    %11 = vector.broadcast %cst_7 : f32 to vector<576x1xf32>
    %12 = arith.addf %10, %11 : vector<576x1xf32>
    %c0_8 = arith.constant 0 : index
    %c0_9 = arith.constant 0 : index
    %13 = vector.load %arg4[%c0_8, %c0_9] : memref<576x49xf32, #tpu.memory_space<vmem>>, vector<576x49xf32>
    %14 = vector.broadcast %12 : vector<576x1xf32> to vector<576x49xf32>
    %15 = arith.mulf %13, %14 : vector<576x49xf32>
    %c0_10 = arith.constant 0 : index
    %c0_11 = arith.constant 0 : index
    %16 = vector.load %arg5[%c0_10, %c0_11] : memref<576x49xf32, #tpu.memory_space<vmem>>, vector<576x49xf32>
    tpu.vector_store %arg5[%c0_10, %c0_11], %15 {strides = array<i32>} : memref<576x49xf32, #tpu.memory_space<vmem>>, vector<576x49xf32>,
    return
  }
  func.func @transform_0(%arg0: i32) -> (i32, i32) {
    %c0_i32 = arith.constant 0 : i32
    %c0_i32_0 = arith.constant 0 : i32
    %c0_i32_1 = arith.constant 0 : i32
    return %c0_i32, %c0_i32_0 : i32, i32
  }
  func.func @transform_1(%arg0: i32) -> (i32, i32) {
    %c0_i32 = arith.constant 0 : i32
    %c0_i32_0 = arith.constant 0 : i32
    return %arg0, %c0_i32 : i32, i32
  }
  func.func @transform_2(%arg0: i32) -> (i32, i32) {
    %c0_i32 = arith.constant 0 : i32
    %c0_i32_0 = arith.constant 0 : i32
    return %arg0, %c0_i32 : i32, i32
  }
  func.func @transform_3(%arg0: i32) -> (i32, i32) {
    %c0_i32 = arith.constant 0 : i32
    %c0_i32_0 = arith.constant 0 : i32
    return %arg0, %c0_i32 : i32, i32
  }
  func.func @transform_4(%arg0: i32) -> (i32, i32) {
    %c0_i32 = arith.constant 0 : i32
    %c0_i32_0 = arith.constant 0 : i32
    return %arg0, %c0_i32 : i32, i32
  }
}

</mosaic_0001>

<bundles_post_ra>
// kernel: se_conv_sigmoid_mul.1
= control target key start
LH: loop header
LB: loop body
LE: loop exit
PB: predicated region body
PF: predicated region fallthrough
CT: control target
= control target key end

     0   :  { %s2409_s15 = smov 0   ;;  %s2848_s0 = inlined_call_operand.vmem [shape: f32[96,1], index: 0, kind: input, shape index: {}]   ;;  %s2849_s1 = inlined_call_operand.vmem [shape: bf16[2304,96], index: 1, kind: input, shape index: {}]   ;;  %s2850_s2 = inlined_call_operand.vmem [shape: f32[2304,1], index: 2, kind: input, shape index: {}]   ;;  %s2851_s3 = inlined_call_operand.vmem [shape: f32[2304,49], index: 3, kind: input, shape index: {}]   ;;  %s2852_s4 = inlined_call_operand.vmem [shape: f32[2304,49], index: 4, kind: output, shape index: {}]  }
   0x1 LB: > { %s1963_s16 = sadd.s32 4294967295, %s2381_s15   ;;  %p1967_p0 = scmp.ge.s32.totalorder %s2381_s15, 1  ;;  %s2381_s15 = sphi %s2409_s15, %s14_s15  }
   0x2   : > { %p185_p1 = scmp.lt.s32.totalorder %s2381_s15, 5 }
   0x4   : > { %p186_p2 = pnand %p1967_p0, %p185_p1 }
   0x5   : > { %s221_s23 = smul.u32 (!%p186_p2), 72, %s1963_s16 }
   0x6   : > { %189 = sbr.rel (%p186_p2) target bundleno = 521 (0x209), region = 36 }
   0x7   : > { %p222_p3 = scmp.lt.s32.totalorder (!%p186_p2), %s221_s23, 287 }
   0xb   : > { %v256_v0 = vld [vmem:[%s2848_s0 + $0x50] sm:$0xff]  ;;  %v257_v1 = vld [vmem:[%s2848_s0 + $0x58] sm:$0xff]  ;;  %v254_v2 = vld [vmem:[%s2848_s0 + $0x40] sm:$0xff]  ;;  %s2854_s23 = smov (!%p222_p3, %s221_s23), 287  ;;  %vm588_vm0 = vcmask 785408   ;;  %v2383_v54 = vmov 0  }
   0xc   : > { %v263_v3 = vpack.c.bf16 %v257_v1, %v256_v0  ;;  %v255_v4 = vld [vmem:[%s2848_s0 + $0x48] sm:$0xff]  ;;  %v252_v6 = vld [vmem:[%s2848_s0 + $0x30] sm:$0xff]  ;;  %v253_v7 = vld [vmem:[%s2848_s0 + $0x38] sm:$0xff]  ;;  %s1968_s8 = sshll.u32 %s2854_s23, 2  ;;  %2194 = vset.pattern.permute.xlu0 %v2383_v54  ;;  %2193 = vset.pattern.permute.xlu1 %v2383_v54  ;;  %s2534_s21 = sshll.u32 %s2854_s23, 3  ;;  %vm1810_vm1 = vcmask 400384  }
   0xd   : > { %v262_v5 = vpack.c.bf16 %v255_v4, %v254_v2  ;;  %v261_v8 = vpack.c.bf16 %v253_v7, %v252_v6  ;;  %v250_v9 = vld [vmem:[%s2848_s0 + $0x20] sm:$0xff]  ;;  %v251_v10 = vld [vmem:[%s2848_s0 + $0x28] sm:$0xff]  ;;  %s2447_s11 = scalar_lea.vmem %s2849_s1, %s1968_s8  ;;  %v248_v11 = vld [vmem:[%s2848_s0 + $0x10] sm:$0xff]  ;;  %s2540_s25 = scalar_lea.vmem %s2850_s2, %s2534_s21 }
   0xe   : > { %2088 = vmatprep.subr.bf16.mxu0 %v263_v3  ;;  %2172 = vmatprep.subr.bf16.mxu1 %v263_v3  ;;  %v2195_v12 = vld [vmem:[%s2447_s11] sm:$0xff]   ;;  %v260_v13 = vpack.c.bf16 %v251_v10, %v250_v9  ;;  %v2196_v14 = vld [vmem:[%s2447_s11 + $0x90] sm:$0xff]   ;;  %v249_v15 = vld [vmem:[%s2848_s0 + $0x18] sm:$0xff]  ;;  %s2621_s27 = scalar_lea.vmem %s2851_s3, %s2534_s21  ;;  %s2629_s30 = scalar_lea.vmem %s2852_s4, %s2534_s21 }
   0xf   : > { %2089 = vmatpush3.bf16.msra.mxu0 %v263_v3  ;;  %2178 = vmatpush3.bf16.msra.mxu1 %v263_v3  ;;  %v259_v16 = vpack.c.bf16 %v249_v15, %v248_v11  ;;  %v246_v17 = vld [vmem:[%s2848_s0] sm:$0xff]  ;;  %v247_v18 = vld [vmem:[%s2848_s0 + $0x8] sm:$0xff]  ;;  %v2198_v21 = vld [vmem:[%s2447_s11 + $0x98] sm:$0xff]  }
  0x10   : > { %2090 = vmatprep.subr.bf16.mxu0 %v262_v5  ;;  %2173 = vmatprep.subr.bf16.mxu1 %v262_v5  ;;  %v258_v19 = vpack.c.bf16 %v247_v18, %v246_v17  ;;  %v2197_v20 = vld [vmem:[%s2447_s11 + $0x8] sm:$0xff]   ;;  %v2199_v22 = vld [vmem:[%s2447_s11 + $0x10] sm:$0xff]   ;;  %v2201_v23 = vld [vmem:[%s2447_s11 + $0xa0] sm:$0xff]  }
  0x11   : > { %2100 = vmatprep.mubr.msk.bf16.mxu0 %vm588_vm0, %v2195_v12  ;;  %2136 = vmatprep.mubr.msk.bf16.mxu1 %vm588_vm0, %v2196_v14  ;;  %v2200_v24 = vld [vmem:[%s2447_s11 + $0x18] sm:$0xff]   ;;  %v2202_v25 = vld [vmem:[%s2447_s11 + $0xa8] sm:$0xff]   ;;  %v2203_v26 = vld [vmem:[%s2447_s11 + $0x20] sm:$0xff]  }
  0x12   : > { %v2205_v27 = vld [vmem:[%s2447_s11 + $0xb0] sm:$0xff]   ;;  %v2204_v28 = vld [vmem:[%s2447_s11 + $0x28] sm:$0xff]   ;;  %v2206_v29 = vld [vmem:[%s2447_s11 + $0xb8] sm:$0xff]  }
  0x13   : > { %2091 = vmatpush3.bf16.msra.mxu0 %v262_v5  ;;  %2179 = vmatpush3.bf16.msra.mxu1 %v262_v5  ;;  %v2207_v30 = vld [vmem:[%s2447_s11 + $0x30] sm:$0xff]   ;;  %v2209_v31 = vld [vmem:[%s2447_s11 + $0xc0] sm:$0xff]   ;;  %v2208_v32 = vld [vmem:[%s2447_s11 + $0x38] sm:$0xff]  }
  0x14   : > { %2092 = vmatprep.subr.bf16.mxu0 %v261_v8  ;;  %2174 = vmatprep.subr.bf16.mxu1 %v261_v8  ;;  %v2210_v33 = vld [vmem:[%s2447_s11 + $0xc8] sm:$0xff]   ;;  %v2211_v34 = vld [vmem:[%s2447_s11 + $0x40] sm:$0xff]   ;;  %v2213_v35 = vld [vmem:[%s2447_s11 + $0xd0] sm:$0xff]  }
  0x15   : > { %v2212_v36 = vld [vmem:[%s2447_s11 + $0x48] sm:$0xff]   ;;  %v2214_v37 = vld [vmem:[%s2447_s11 + $0xd8] sm:$0xff]   ;;  %v2215_v38 = vld [vmem:[%s2447_s11 + $0x50] sm:$0xff]  }
  0x16   : > { %v2217_v39 = vld [vmem:[%s2447_s11 + $0xe0] sm:$0xff]   ;;  %v2216_v40 = vld [vmem:[%s2447_s11 + $0x58] sm:$0xff]   ;;  %v2218_v41 = vld [vmem:[%s2447_s11 + $0xe8] sm:$0xff]  }
  0x17   : > { %2093 = vmatpush3.bf16.msra.mxu0 %v261_v8  ;;  %2180 = vmatpush3.bf16.msra.mxu1 %v261_v8  ;;  %v2219_v42 = vld [vmem:[%s2447_s11 + $0x60] sm:$0xff]   ;;  %v2221_v43 = vld [vmem:[%s2447_s11 + $0xf0] sm:$0xff]   ;;  %v2220_v44 = vld [vmem:[%s2447_s11 + $0x68] sm:$0xff]  }
  0x18   : > { %2094 = vmatprep.subr.bf16.mxu0 %v260_v13  ;;  %2175 = vmatprep.subr.bf16.mxu1 %v260_v13  ;;  %v2222_v45 = vld [vmem:[%s2447_s11 + $0xf8] sm:$0xff]   ;;  %v2223_v46 = vld [vmem:[%s2447_s11 + $0x70] sm:$0xff]   ;;  %v2225_v47 = vld [vmem:[%s2447_s11 + $0x100] sm:$0xff]  }
  0x19   : > { %v2224_v48 = vld [vmem:[%s2447_s11 + $0x78] sm:$0xff]   ;;  %v2226_v49 = vld [vmem:[%s2447_s11 + $0x108] sm:$0xff]   ;;  %v2227_v50 = vld [vmem:[%s2447_s11 + $0x80] sm:$0xff]  }
  0x1a   : > { %v2229_v51 = vld [vmem:[%s2447_s11 + $0x110] sm:$0xff]   ;;  %v2228_v52 = vld [vmem:[%s2447_s11 + $0x88] sm:$0xff]   ;;  %v2230_v53 = vld [vmem:[%s2447_s11 + $0x118] sm:$0xff]  }
  0x1b   : > { %2095 = vmatpush3.bf16.msra.mxu0 %v260_v13  ;;  %2181 = vmatpush3.bf16.msra.mxu1 %v260_v13  ;;  %v338_v55 = vld [vmem:[%s2540_s25 + $0x10] sm:$0xff]  ;;  %v336_v59 = vld [vmem:[%s2540_s25] sm:$0xff]  ;;  %v339_v1 = vld [vmem:[%s2540_s25 + $0x18] sm:$0xff] }
  0x1c   : > { %2096 = vmatprep.subr.bf16.mxu0 %v259_v16  ;;  %2176 = vmatprep.subr.bf16.mxu1 %v259_v16  ;;  %v374_v56 = vld [vmem:[%s2540_s25 + $0x130] sm:$0xff]  ;;  %v372_v60 = vld [vmem:[%s2540_s25 + $0x120] sm:$0xff]  ;;  %v375_v6 = vld [vmem:[%s2540_s25 + $0x138] sm:$0xff] }
  0x1d   : > { %v337_v9 = vld [vmem:[%s2540_s25 + $0x8] sm:$0xff] }
  0x1e   : > { %v373_v10 = vld [vmem:[%s2540_s25 + $0x128] sm:$0xff] }
  0x1f   : > { %2097 = vmatpush3.bf16.msra.mxu0 %v259_v16  ;;  %2182 = vmatpush3.bf16.msra.mxu1 %v259_v16 }
  0x20   : > { %2098 = vmatprep.subr.bf16.mxu0 %v258_v19  ;;  %2177 = vmatprep.subr.bf16.mxu1 %v258_v19 }
  0x23   : > { %2099 = vmatpush3.bf16.msra.mxu0 %v258_v19  ;;  %2183 = vmatpush3.bf16.msra.mxu1 %v258_v19 }
  0x26   : > { %2101 = vmatmul.mubr.msk.bf16.vlgmr.msra.gmra.mxu0 %vm588_vm0, %v2197_v20  ;;  %2137 = vmatmul.mubr.msk.bf16.vlgmr.msra.gmra.mxu1 %vm588_vm0, %v2198_v21  ;;  %v342_v20 = vld [vmem:[%s2540_s25 + $0x30] sm:$0xff] }
  0x27   : > { %2104 = vmatprep.mubr.msk.bf16.mxu0 %vm588_vm0, %v2199_v22  ;;  %2140 = vmatprep.mubr.msk.bf16.mxu1 %vm588_vm0, %v2201_v23 }
  0x2e   : > { %2105 = vmatmul.mubr.msk.bf16.gmra.mxu0 %vm588_vm0, %v2200_v24  ;;  %2141 = vmatmul.mubr.msk.bf16.gmra.mxu1 %vm588_vm0, %v2202_v25 }
  0x2f   : > { %2108 = vmatprep.mubr.msk.bf16.mxu0 %vm588_vm0, %v2203_v26  ;;  %2144 = vmatprep.mubr.msk.bf16.mxu1 %vm588_vm0, %v2205_v27 }
  0x36   : > { %2109 = vmatmul.mubr.msk.bf16.gmra.mxu0 %vm588_vm0, %v2204_v28  ;;  %2145 = vmatmul.mubr.msk.bf16.gmra.mxu1 %vm588_vm0, %v2206_v29  ;;  %v343_v28 = vld [vmem:[%s2540_s25 + $0x38] sm:$0xff] }
  0x37   : > { %2112 = vmatprep.mubr.msk.bf16.mxu0 %vm588_vm0, %v2207_v30  ;;  %2148 = vmatprep.mubr.msk.bf16.mxu1 %vm588_vm0, %v2209_v31  ;;  %v378_v30 = vld [vmem:[%s2540_s25 + $0x150] sm:$0xff]  ;;  %v379_v31 = vld [vmem:[%s2540_s25 + $0x158] sm:$0xff] }
  0x3e   : > { %2113 = vmatmul.mubr.msk.bf16.gmra.mxu0 %vm588_vm0, %v2208_v32  ;;  %2149 = vmatmul.mubr.msk.bf16.gmra.mxu1 %vm588_vm0, %v2210_v33 }
  0x3f   : > { %2116 = vmatprep.mubr.msk.bf16.mxu0 %vm588_vm0, %v2211_v34  ;;  %2152 = vmatprep.mubr.msk.bf16.mxu1 %vm588_vm0, %v2213_v35 }
  0x46   : > { %2117 = vmatmul.mubr.msk.bf16.gmra.mxu0 %vm588_vm0, %v2212_v36  ;;  %2153 = vmatmul.mubr.msk.bf16.gmra.mxu1 %vm588_vm0, %v2214_v37 }
  0x47   : > { %2120 = vmatprep.mubr.msk.bf16.mxu0 %vm588_vm0, %v2215_v38  ;;  %2156 = vmatprep.mubr.msk.bf16.mxu1 %vm588_vm0, %v2217_v39  ;;  %v341_v38 = vld [vmem:[%s2540_s25 + $0x28] sm:$0xff] }
  0x4e   : > { %2121 = vmatmul.mubr.msk.bf16.gmra.mxu0 %vm588_vm0, %v2216_v40  ;;  %2157 = vmatmul.mubr.msk.bf16.gmra.mxu1 %vm588_vm0, %v2218_v41  ;;  %v340_v40 = vld [vmem:[%s2540_s25 + $0x20] sm:$0xff] }
  0x4f   : > { %2124 = vmatprep.mubr.msk.bf16.mxu0 %vm588_vm0, %v2219_v42  ;;  %2160 = vmatprep.mubr.msk.bf16.mxu1 %vm588_vm0, %v2221_v43  ;;  %v376_v42 = vld [vmem:[%s2540_s25 + $0x140] sm:$0xff] }
  0x56   : > { %2125 = vmatmul.mubr.msk.bf16.gmra.mxu0 %vm588_vm0, %v2220_v44  ;;  %2161 = vmatmul.mubr.msk.bf16.gmra.mxu1 %vm588_vm0, %v2222_v45 }
  0x57   : > { %2128 = vmatprep.mubr.msk.bf16.mxu0 %vm588_vm0, %v2223_v46  ;;  %2164 = vmatprep.mubr.msk.bf16.mxu1 %vm588_vm0, %v2225_v47  ;;  %v377_v47 = vld [vmem:[%s2540_s25 + $0x148] sm:$0xff] }
  0x5e   : > { %2129 = vmatmul.mubr.msk.bf16.gmra.mxu0 %vm588_vm0, %v2224_v48  ;;  %2165 = vmatmul.mubr.msk.bf16.gmra.mxu1 %vm588_vm0, %v2226_v49 }
  0x5f   : > { %2132 = vmatprep.mubr.msk.bf16.mxu0 %vm588_vm0, %v2227_v50  ;;  %2168 = vmatprep.mubr.msk.bf16.mxu1 %vm588_vm0, %v2229_v51 }
  0x66   : > { %2133 = vmatmul.mubr.msk.bf16.gmra.mxu0 %vm588_vm0, %v2228_v52  ;;  %2169 = vmatmul.mubr.msk.bf16.gmra.mxu1 %vm588_vm0, %v2230_v53 }
  0xe6   : > { %v2102_v57 = vpop.f32.mrf.mxu0  ;;  %v2138_v58 = vpop.f32.mrf.mxu1 }
  0xe7   : > { %v740_v61 = vadd.f32 %v2102_v57, %v338_v55  ;;  %v884_v62 = vadd.f32 %v2138_v58, %v374_v56 }
  0xe8   : > { %v731_v63 = vpop.f32.mrf.mxu0  ;;  %v875_v0 = vpop.f32.mrf.mxu1 }
  0xe9   : > { %v1020_v2 = vmul.f32 0.5, %v740_v61  ;;  %v1056_v3 = vmul.f32 0.5, %v884_v62  ;;  %v732_v4 = vadd.f32 %v731_v63, %v336_v59  ;;  %v876_v5 = vadd.f32 %v875_v0, %v372_v60 }
  0xea   : > { %v2103_v7 = vpop.f32.mrf.mxu0  ;;  %v2139_v8 = vpop.f32.mrf.mxu1 }
  0xeb   : > { %2231 = vtanh.f32 %v1020_v2  ;;  %v1018_v11 = vmul.f32 0.5, %v732_v4  ;;  %v1054_v12 = vmul.f32 0.5, %v876_v5  ;;  %v743_v13 = vadd.f32 %v2103_v7, %v339_v1  ;;  %v347_v1 = vld [vmem:[%s2540_s25 + $0x58] sm:$0xff]  ;;  %v346_v5 = vld [vmem:[%s2540_s25 + $0x50] sm:$0xff] }
  0xec   : > { %2233 = vtanh.f32 %v1056_v3  ;;  %v887_v14 = vadd.f32 %v2139_v8, %v375_v6  ;;  %v734_v15 = vpop.f32.mrf.mxu0  ;;  %v878_v16 = vpop.f32.mrf.mxu1 }
  0xed   : > { %2235 = vtanh.f32 %v1018_v11  ;;  %v1021_v17 = vmul.f32 0.5, %v743_v13  ;;  %v735_v18 = vadd.f32 %v734_v15, %v337_v9  ;;  %v879_v19 = vadd.f32 %v878_v16, %v373_v10  ;;  %v383_v16 = vld [vmem:[%s2540_s25 + $0x178] sm:$0xff] }
  0xee   : > { %2237 = vtanh.f32 %v1054_v12  ;;  %v1057_v21 = vmul.f32 0.5, %v887_v14  ;;  %v2106_v22 = vpop.f32.mrf.mxu0  ;;  %v2142_v23 = vpop.f32.mrf.mxu1 }
  0xef   : > { %2239 = vtanh.f32 %v1021_v17  ;;  %v1055_v24 = vmul.f32 0.5, %v879_v19  ;;  %v1019_v25 = vmul.f32 0.5, %v735_v18  ;;  %v756_v26 = vadd.f32 %v2106_v22, %v342_v20  ;;  %v382_v19 = vld [vmem:[%s2540_s25 + $0x170] sm:$0xff] }
  0xf0   : > { %2241 = vtanh.f32 %v1057_v21  ;;  %v747_v27 = vpop.f32.mrf.mxu0  ;;  %v891_v29 = vpop.f32.mrf.mxu1  ;;  %v900_v36 = vadd.f32 %v2142_v23, %v378_v30  ;;  %v344_v21 = vld [vmem:[%s2540_s25 + $0x40] sm:$0xff] }
  0xf1   : > { %2243 = vtanh.f32 %v1055_v24  ;;  %v1024_v35 = vmul.f32 0.5, %v756_v26  ;;  %v748_v49 = vadd.f32 %v747_v27, %v340_v40  ;;  %v892_v52 = vadd.f32 %v891_v29, %v376_v42  ;;  %v345_v24 = vld [vmem:[%s2540_s25 + $0x48] sm:$0xff] }
  0xf2   : > { %v2107_v32 = vpop.f32.mrf.mxu0  ;;  %v2143_v34 = vpop.f32.mrf.mxu1  ;;  %2245 = vtanh.f32 %v1019_v25  ;;  %v1060_v50 = vmul.f32 0.5, %v900_v36  ;;  %v380_v36 = vld [vmem:[%s2540_s25 + $0x160] sm:$0xff]  ;;  %v381_v40 = vld [vmem:[%s2540_s25 + $0x168] sm:$0xff] }
  0xf3   : > { %v759_v33 = vadd.f32 %v2107_v32, %v343_v28  ;;  %v903_v39 = vadd.f32 %v2143_v34, %v379_v31  ;;  %v1022_v63 = vmul.f32 0.5, %v748_v49  ;;  %v1058_v4 = vmul.f32 0.5, %v892_v52 }
  0xf4   : > { %v750_v37 = vpop.f32.mrf.mxu0  ;;  %v894_v46 = vpop.f32.mrf.mxu1 }
  0xf5   : > { %v1025_v41 = vmul.f32 0.5, %v759_v33  ;;  %v751_v44 = vadd.f32 %v750_v37, %v341_v38  ;;  %v1061_v45 = vmul.f32 0.5, %v903_v39  ;;  %v895_v55 = vadd.f32 %v894_v46, %v377_v47 }
  0xf6   : > { %v2110_v43 = vpop.f32.mrf.mxu0  ;;  %v2146_v58 = vpop.f32.mrf.mxu1 }
  0xf7   : > { %2247 = vtanh.f32 %v1025_v41  ;;  %v1023_v60 = vmul.f32 0.5, %v751_v44  ;;  %v1059_v7 = vmul.f32 0.5, %v895_v55  ;;  %v772_v14 = vadd.f32 %v2110_v43, %v346_v5 }
  0xf8   : > { %v2232_v48 = vpop.eup %2231  ;;  %2249 = vtanh.f32 %v1024_v35  ;;  %v763_v57 = vpop.f32.mrf.mxu0  ;;  %v916_v30 = vadd.f32 %v2146_v58, %v382_v19  ;;  %v351_v58 = vld [vmem:[%s2540_s25 + $0x78] sm:$0xff] }
  0xf9   : > { %v2234_v51 = vpop.eup %2233  ;;  %v1164_v53 = vmul.f32 0.5, %v2232_v48  ;;  %2251 = vtanh.f32 %v1061_v45  ;;  %v907_v9 = vpop.f32.mrf.mxu1  ;;  %v1028_v29 = vmul.f32 0.5, %v772_v14  ;;  %v764_v34 = vadd.f32 %v763_v57, %v344_v21 }
  0xfa   : > { %v2236_v54 = vpop.eup %2235  ;;  %v1200_v56 = vmul.f32 0.5, %v2234_v51  ;;  %2253 = vtanh.f32 %v1060_v50  ;;  %v2111_v8 = vpop.f32.mrf.mxu0  ;;  %v1064_v44 = vmul.f32 0.5, %v916_v30  ;;  %v908_v48 = vadd.f32 %v907_v9, %v380_v36  ;;  %v387_v9 = vld [vmem:[%s2540_s25 + $0x198] sm:$0xff] }
  0xfb   : > { %v2238_v59 = vpop.eup %2237  ;;  %v1236_v61 = vadd.f32 0.5, %v1164_v53  ;;  %v1162_v2 = vmul.f32 0.5, %v2236_v54  ;;  %2255 = vtanh.f32 %v1023_v60  ;;  %v775_v10 = vadd.f32 %v2111_v8, %v347_v1  ;;  %v2147_v20 = vpop.f32.mrf.mxu1 }
  0xfc   : > { %v2240_v62 = vpop.eup %2239  ;;  %v1272_v0 = vadd.f32 0.5, %v1200_v56  ;;  %2257 = vtanh.f32 %v1022_v63  ;;  %v1198_v17 = vmul.f32 0.5, %v2238_v59  ;;  %v766_v23 = vpop.f32.mrf.mxu0  ;;  %v919_v25 = vadd.f32 %v2147_v20, %v383_v16  ;;  %v349_v16 = vld [vmem:[%s2540_s25 + $0x68] sm:$0xff] }
  0xfd   : > { %v2242_v3 = vpop.eup %2241  ;;  %1390 = vperm.xlu1 %2193, %v1236_v61   ;;  %v1165_v6 = vmul.f32 0.5, %v2240_v62  ;;  %v1234_v15 = vadd.f32 0.5, %v1162_v2  ;;  %2259 = vtanh.f32 %v1058_v4  ;;  %v1029_v22 = vmul.f32 0.5, %v775_v10  ;;  %v910_v39 = vpop.f32.mrf.mxu1  ;;  %v350_v62 = vld [vmem:[%s2540_s25 + $0x70] sm:$0xff] }
  0xfe   : > { %1570 = vperm.xlu0 %2194, %v1272_v0   ;;  %v1201_v12 = vmul.f32 0.5, %v2242_v3  ;;  %v2244_v13 = vpop.eup %2243  ;;  %2261 = vtanh.f32 %v1059_v7  ;;  %v1270_v31 = vadd.f32 0.5, %v1198_v17  ;;  %v767_v35 = vadd.f32 %v766_v23, %v345_v24  ;;  %v2114_v37 = vpop.f32.mrf.mxu0 }
  0xff   : > { %v1237_v11 = vadd.f32 0.5, %v1165_v6  ;;  %v2246_v18 = vpop.eup %2245  ;;  %v1199_v27 = vmul.f32 0.5, %v2244_v13  ;;  %2263 = vtanh.f32 %v1029_v22  ;;  %v1065_v38 = vmul.f32 0.5, %v919_v25  ;;  %v2150_v51 = vpop.f32.mrf.mxu1  ;;  %v348_v13 = vld [vmem:[%s2540_s25 + $0x60] sm:$0xff] }
 0x100   : > { %v1273_v26 = vadd.f32 0.5, %v1201_v12  ;;  %v1163_v32 = vmul.f32 0.5, %v2246_v18  ;;  %2265 = vtanh.f32 %v1028_v29  ;;  %v911_v49 = vadd.f32 %v910_v39, %v381_v40  ;;  %v779_v50 = vpop.f32.mrf.mxu0 }
 0x101   : > { %1395 = vperm.xlu1 %2193, %v1237_v11   ;;  %v1271_v41 = vadd.f32 0.5, %v1199_v27  ;;  %v1027_v52 = vmul.f32 0.5, %v767_v35  ;;  %2267 = vtanh.f32 %v1065_v38  ;;  %v1026_v56 = vmul.f32 0.5, %v764_v34  ;;  %v923_v2 = vpop.f32.mrf.mxu1  ;;  %v386_v11 = vld [vmem:[%s2540_s25 + $0x190] sm:$0xff] }
 0x102   : > { %1380 = vperm.xlu0 %2194, %v1234_v15   ;;  %v1235_v45 = vadd.f32 0.5, %v1163_v32  ;;  %2269 = vtanh.f32 %v1064_v44  ;;  %v1062_v61 = vmul.f32 0.5, %v908_v48  ;;  %v1063_v0 = vmul.f32 0.5, %v911_v49  ;;  %v2115_v1 = vpop.f32.mrf.mxu0  ;;  %v385_v32 = vld [vmem:[%s2540_s25 + $0x188] sm:$0xff] }
 0x103   : > { %2271 = vtanh.f32 %v1027_v52  ;;  %v791_v4 = vadd.f32 %v2115_v1, %v351_v58  ;;  %v788_v7 = vadd.f32 %v2114_v37, %v350_v62  ;;  %v2151_v12 = vpop.f32.mrf.mxu1  ;;  %v932_v22 = vadd.f32 %v2150_v51, %v386_v11  ;;  %v391_v1 = vld [vmem:[%s2540_s25 + $0x1b8] sm:$0xff] }
 0x104   : > { %v2248_v28 = vpop.eup %2247  ;;  %2273 = vtanh.f32 %v1026_v56  ;;  %v782_v15 = vpop.f32.mrf.mxu0  ;;  %v935_v17 = vadd.f32 %v2151_v12, %v387_v9 }
 0x105   : > { %v2250_v33 = vpop.eup %2249  ;;  %1575 = vperm.xlu1 %2193, %v1273_v26   ;;  %v1169_v42 = vmul.f32 0.5, %v2248_v28  ;;  %2275 = vtanh.f32 %v1062_v61  ;;  %v1033_v14 = vmul.f32 0.5, %v791_v4  ;;  %v1032_v21 = vmul.f32 0.5, %v788_v7  ;;  %v384_v28 = vld [vmem:[%s2540_s25 + $0x180] sm:$0xff] }
 0x106   : > { %1560 = vperm.xlu0 %2194, %v1270_v31   ;;  %v2252_v43 = vpop.eup %2251  ;;  %v1168_v46 = vmul.f32 0.5, %v2250_v33  ;;  %2277 = vtanh.f32 %v1063_v0  ;;  %v780_v26 = vadd.f32 %v779_v50, %v348_v13  ;;  %v783_v27 = vadd.f32 %v782_v15, %v349_v16  ;;  %v2118_v29 = vpop.f32.mrf.mxu0  ;;  %v355_v50 = vld [vmem:[%s2540_s25 + $0x98] sm:$0xff] }
 0x107   : > { %v2254_v47 = vpop.eup %2253  ;;  %v1241_v53 = vadd.f32 0.5, %v1169_v42  ;;  %v1205_v54 = vmul.f32 0.5, %v2252_v43  ;;  %2279 = vtanh.f32 %v1033_v14  ;;  %v1069_v30 = vmul.f32 0.5, %v935_v17  ;;  %v926_v31 = vpop.f32.mrf.mxu1 }
 0x108   : > { %v2256_v55 = vpop.eup %2255  ;;  %v1240_v57 = vadd.f32 0.5, %v1168_v46  ;;  %v1204_v59 = vmul.f32 0.5, %v2254_v47  ;;  %2281 = vtanh.f32 %v1032_v21  ;;  %v1068_v36 = vmul.f32 0.5, %v932_v22  ;;  %v795_v42 = vpop.f32.mrf.mxu0 }
 0x109   : > { %1565 = vperm.xlu1 %2193, %v1271_v41   ;;  %v2258_v60 = vpop.eup %2257  ;;  %v1277_v5 = vadd.f32 0.5, %v1205_v54  ;;  %v1167_v6 = vmul.f32 0.5, %v2256_v55  ;;  %v924_v40 = vadd.f32 %v923_v2, %v384_v28  ;;  %v927_v41 = vadd.f32 %v926_v31, %v385_v32  ;;  %v2154_v43 = vpop.f32.mrf.mxu1  ;;  %v354_v54 = vld [vmem:[%s2540_s25 + $0x90] sm:$0xff] }
 0x10a   : > { %1385 = vperm.xlu0 %2194, %v1235_v45   ;;  %v2260_v63 = vpop.eup %2259  ;;  %v1276_v8 = vadd.f32 0.5, %v1204_v59  ;;  %v1166_v10 = vmul.f32 0.5, %v2258_v60  ;;  %v1031_v44 = vmul.f32 0.5, %v783_v27  ;;  %2283 = vtanh.f32 %v1069_v30 }
 0x10b   : > { %v2262_v3 = vpop.eup %2261  ;;  %v1239_v18 = vadd.f32 0.5, %v1167_v6  ;;  %v1202_v24 = vmul.f32 0.5, %v2260_v63  ;;  %v1030_v48 = vmul.f32 0.5, %v780_v26  ;;  %2285 = vtanh.f32 %v1068_v36  ;;  %v939_v58 = vpop.f32.mrf.mxu1 }
 0x10c   : > { %v1203_v19 = vmul.f32 0.5, %v2262_v3  ;;  %v2264_v20 = vpop.eup %2263  ;;  %v1238_v23 = vadd.f32 0.5, %v1166_v10  ;;  %v1067_v56 = vmul.f32 0.5, %v927_v41  ;;  %2287 = vtanh.f32 %v1031_v44  ;;  %v390_v3 = vld [vmem:[%s2540_s25 + $0x1b0] sm:$0xff] }
 0x10d   : > { %1415 = vperm.xlu1 %2193, %v1241_v53   ;;  %v2266_v25 = vpop.eup %2265  ;;  %v1173_v34 = vmul.f32 0.5, %v2264_v20  ;;  %v1274_v37 = vadd.f32 0.5, %v1202_v24  ;;  %v1066_v53 = vmul.f32 0.5, %v924_v40  ;;  %2289 = vtanh.f32 %v1030_v48  ;;  %v2155_v4 = vpop.f32.mrf.mxu1  ;;  %v388_v20 = vld [vmem:[%s2540_s25 + $0x1a0] sm:$0xff]  ;;  %v389_v24 = vld [vmem:[%s2540_s25 + $0x1a8] sm:$0xff] }
 0x10e   : > { %1410 = vperm.xlu0 %2194, %v1240_v57   ;;  %v1275_v33 = vadd.f32 0.5, %v1203_v19  ;;  %v2268_v35 = vpop.eup %2267  ;;  %v1172_v38 = vmul.f32 0.5, %v2266_v25  ;;  %v2119_v57 = vpop.f32.mrf.mxu0  ;;  %v804_v63 = vadd.f32 %v2118_v29, %v354_v54  ;;  %v951_v9 = vadd.f32 %v2155_v4, %v391_v1 }
 0x10f   : > { %v2270_v39 = vpop.eup %2269  ;;  %v1245_v45 = vadd.f32 0.5, %v1173_v34  ;;  %v1209_v46 = vmul.f32 0.5, %v2268_v35  ;;  %v807_v60 = vadd.f32 %v2119_v57, %v355_v50  ;;  %2291 = vtanh.f32 %v1066_v53  ;;  %v395_v57 = vld [vmem:[%s2540_s25 + $0x1d8] sm:$0xff] }
 0x110   : > { %v2272_v47 = vpop.eup %2271  ;;  %v1244_v49 = vadd.f32 0.5, %v1172_v38  ;;  %v1208_v51 = vmul.f32 0.5, %v2270_v39  ;;  %2293 = vtanh.f32 %v1067_v56  ;;  %v798_v7 = vpop.f32.mrf.mxu0  ;;  %v1036_v13 = vmul.f32 0.5, %v804_v63 }
 0x111   : > { %1595 = vperm.xlu1 %2193, %v1277_v5   ;;  %v2274_v52 = vpop.eup %2273  ;;  %v1281_v61 = vadd.f32 0.5, %v1209_v46  ;;  %v1171_v62 = vmul.f32 0.5, %v2272_v47  ;;  %v352_v5 = vld [vmem:[%s2540_s25 + $0x80] sm:$0xff]  ;;  %v1037_v6 = vmul.f32 0.5, %v807_v60  ;;  %v948_v14 = vadd.f32 %v2154_v43, %v390_v3  ;;  %v358_v46 = vld [vmem:[%s2540_s25 + $0xb0] sm:$0xff] }
 0x112   : > { %1590 = vperm.xlu0 %2194, %v1276_v8   ;;  %v2276_v55 = vpop.eup %2275  ;;  %v1280_v0 = vadd.f32 0.5, %v1208_v51  ;;  %v1170_v2 = vmul.f32 0.5, %v2274_v52  ;;  %v353_v8 = vld [vmem:[%s2540_s25 + $0x88] sm:$0xff]  ;;  %v2122_v21 = vpop.f32.mrf.mxu0  ;;  %v1073_v22 = vmul.f32 0.5, %v951_v9  ;;  %v940_v32 = vadd.f32 %v939_v58, %v388_v20 }
 0x113   : > { %v2278_v59 = vpop.eup %2277  ;;  %v1243_v10 = vadd.f32 0.5, %v1171_v62  ;;  %v1206_v16 = vmul.f32 0.5, %v2276_v55  ;;  %v799_v19 = vadd.f32 %v798_v7, %v353_v8  ;;  %2295 = vtanh.f32 %v1037_v6 }
 0x114   : > { %v1207_v11 = vmul.f32 0.5, %v2278_v59  ;;  %v2280_v12 = vpop.eup %2279  ;;  %v1242_v15 = vadd.f32 0.5, %v1170_v2  ;;  %2297 = vtanh.f32 %v1036_v13  ;;  %v1072_v28 = vmul.f32 0.5, %v948_v14  ;;  %v811_v34 = vpop.f32.mrf.mxu0  ;;  %v394_v59 = vld [vmem:[%s2540_s25 + $0x1d0] sm:$0xff] }
 0x115   : > { %1405 = vperm.xlu1 %2193, %v1239_v18   ;;  %v2282_v17 = vpop.eup %2281  ;;  %v796_v18 = vadd.f32 %v795_v42, %v352_v5  ;;  %v1177_v26 = vmul.f32 0.5, %v2280_v12  ;;  %v1278_v29 = vadd.f32 0.5, %v1206_v16  ;;  %v1035_v36 = vmul.f32 0.5, %v799_v19  ;;  %v359_v42 = vld [vmem:[%s2540_s25 + $0xb8] sm:$0xff]  ;;  %v392_v12 = vld [vmem:[%s2540_s25 + $0x1c0] sm:$0xff]  ;;  %v393_v16 = vld [vmem:[%s2540_s25 + $0x1c8] sm:$0xff] }
 0x116   : > { %1400 = vperm.xlu0 %2194, %v1238_v23   ;;  %v942_v23 = vpop.f32.mrf.mxu1  ;;  %v1279_v25 = vadd.f32 0.5, %v1207_v11  ;;  %v1176_v30 = vmul.f32 0.5, %v2282_v17  ;;  %2299 = vtanh.f32 %v1073_v22  ;;  %v820_v55 = vadd.f32 %v2122_v21, %v358_v46 }
 0x117   : > { %v2284_v27 = vpop.eup %2283  ;;  %v1034_v40 = vmul.f32 0.5, %v796_v18  ;;  %2301 = vtanh.f32 %v1072_v28 }
 0x118   : > { %v2286_v31 = vpop.eup %2285  ;;  %v2158_v35 = vpop.f32.mrf.mxu1  ;;  %v1213_v38 = vmul.f32 0.5, %v2284_v27  ;;  %v1248_v41 = vadd.f32 0.5, %v1176_v30  ;;  %2303 = vtanh.f32 %v1035_v36  ;;  %v1040_v5 = vmul.f32 0.5, %v820_v55 }
 0x119   : > { %1585 = vperm.xlu1 %2193, %v1275_v33   ;;  %v943_v33 = vadd.f32 %v942_v23, %v389_v24  ;;  %v2288_v39 = vpop.eup %2287  ;;  %v1212_v43 = vmul.f32 0.5, %v2286_v31  ;;  %2305 = vtanh.f32 %v1034_v40  ;;  %v964_v6 = vadd.f32 %v2158_v35, %v394_v59 }
 0x11a   : > { %1580 = vperm.xlu0 %2194, %v1274_v37   ;;  %v1249_v37 = vadd.f32 0.5, %v1177_v26  ;;  %v2290_v44 = vpop.eup %2289  ;;  %v955_v50 = vpop.f32.mrf.mxu1  ;;  %v1285_v53 = vadd.f32 0.5, %v1213_v38  ;;  %v1175_v54 = vmul.f32 0.5, %v2288_v39  ;;  %v362_v38 = vld [vmem:[%s2540_s25 + $0xd0] sm:$0xff] }
 0x11b   : > { %v1071_v48 = vmul.f32 0.5, %v943_v33  ;;  %v1284_v56 = vadd.f32 0.5, %v1212_v43  ;;  %v1174_v58 = vmul.f32 0.5, %v2290_v44  ;;  %v1076_v20 = vmul.f32 0.5, %v964_v6 }
 0x11c   : > { %v2292_v47 = vpop.eup %2291  ;;  %v2159_v60 = vpop.f32.mrf.mxu1  ;;  %v1247_v2 = vadd.f32 0.5, %v1175_v54  ;;  %v956_v24 = vadd.f32 %v955_v50, %v392_v12 }
 0x11d   : > { %1435 = vperm.xlu1 %2193, %v1245_v45   ;;  %v1070_v45 = vmul.f32 0.5, %v940_v32  ;;  %v2294_v51 = vpop.eup %2293  ;;  %v967_v1 = vadd.f32 %v2159_v60, %v395_v57  ;;  %v1246_v7 = vadd.f32 0.5, %v1174_v58  ;;  %v1210_v8 = vmul.f32 0.5, %v2292_v47 }
 0x11e   : > { %1430 = vperm.xlu0 %2194, %v1244_v49   ;;  %v2123_v49 = vpop.f32.mrf.mxu0  ;;  %v1211_v3 = vmul.f32 0.5, %v2294_v51  ;;  %v398_v51 = vld [vmem:[%s2540_s25 + $0x1f0] sm:$0xff] }
 0x11f   : > { %v823_v52 = vadd.f32 %v2123_v49, %v359_v42  ;;  %2307 = vtanh.f32 %v1070_v45  ;;  %v1077_v14 = vmul.f32 0.5, %v967_v1  ;;  %v1282_v21 = vadd.f32 0.5, %v1210_v8  ;;  %v399_v49 = vld [vmem:[%s2540_s25 + $0x1f8] sm:$0xff]  ;;  %v397_v8 = vld [vmem:[%s2540_s25 + $0x1e8] sm:$0xff] }
 0x120   : > { %2309 = vtanh.f32 %v1071_v48  ;;  %v814_v63 = vpop.f32.mrf.mxu0  ;;  %v2296_v4 = vpop.eup %2295  ;;  %v1283_v17 = vadd.f32 0.5, %v1211_v3 }
 0x121   : > { %1615 = vperm.xlu1 %2193, %v1281_v61   ;;  %v356_v61 = vld [vmem:[%s2540_s25 + $0xa0] sm:$0xff]  ;;  %v1041_v62 = vmul.f32 0.5, %v823_v52  ;;  %v2298_v9 = vpop.eup %2297  ;;  %v1181_v18 = vmul.f32 0.5, %v2296_v4 }
 0x122   : > { %1610 = vperm.xlu0 %2194, %v1280_v0   ;;  %v357_v0 = vld [vmem:[%s2540_s25 + $0xa8] sm:$0xff]  ;;  %v2126_v13 = vpop.f32.mrf.mxu0  ;;  %v1180_v22 = vmul.f32 0.5, %v2298_v9 }
 0x123   : > { %v815_v11 = vadd.f32 %v814_v63, %v357_v0  ;;  %2311 = vtanh.f32 %v1041_v62  ;;  %v2300_v19 = vpop.eup %2299  ;;  %v836_v47 = vadd.f32 %v2126_v13, %v362_v38 }
 0x124   : > { %2313 = vtanh.f32 %v1040_v5  ;;  %v2302_v23 = vpop.eup %2301  ;;  %v827_v26 = vpop.f32.mrf.mxu0  ;;  %v1217_v30 = vmul.f32 0.5, %v2300_v19  ;;  %v1252_v33 = vadd.f32 0.5, %v1180_v22  ;;  %v396_v5 = vld [vmem:[%s2540_s25 + $0x1e0] sm:$0xff] }
 0x125   : > { %1425 = vperm.xlu1 %2193, %v1243_v10   ;;  %v812_v10 = vadd.f32 %v811_v34, %v356_v61  ;;  %v1039_v28 = vmul.f32 0.5, %v815_v11  ;;  %2315 = vtanh.f32 %v1077_v14  ;;  %v2304_v31 = vpop.eup %2303  ;;  %v363_v34 = vld [vmem:[%s2540_s25 + $0xd8] sm:$0xff]  ;;  %v1216_v35 = vmul.f32 0.5, %v2302_v23 }
 0x126   : > { %1420 = vperm.xlu0 %2194, %v1242_v15   ;;  %v958_v15 = vpop.f32.mrf.mxu1  ;;  %2317 = vtanh.f32 %v1076_v20  ;;  %v2306_v36 = vpop.eup %2305  ;;  %v1289_v45 = vadd.f32 0.5, %v1217_v30  ;;  %v1179_v46 = vmul.f32 0.5, %v2304_v31  ;;  %v1044_v61 = vmul.f32 0.5, %v836_v47  ;;  %v366_v30 = vld [vmem:[%s2540_s25 + $0xf0] sm:$0xff] }
 0x127   : > { %v1038_v32 = vmul.f32 0.5, %v812_v10  ;;  %2319 = vtanh.f32 %v1039_v28  ;;  %v1288_v48 = vadd.f32 0.5, %v1216_v35  ;;  %v1178_v50 = vmul.f32 0.5, %v2306_v36 }
 0x128   : > { %v2162_v27 = vpop.f32.mrf.mxu1  ;;  %v1251_v58 = vadd.f32 0.5, %v1179_v46  ;;  %v364_v46 = vld [vmem:[%s2540_s25 + $0xe0] sm:$0xff] }
 0x129   : > { %1605 = vperm.xlu1 %2193, %v1279_v25   ;;  %v959_v25 = vadd.f32 %v958_v15, %v393_v16  ;;  %2321 = vtanh.f32 %v1038_v32  ;;  %v980_v62 = vadd.f32 %v2162_v27, %v398_v51  ;;  %v1250_v63 = vadd.f32 0.5, %v1178_v50 }
 0x12a   : > { %1600 = vperm.xlu0 %2194, %v1278_v29   ;;  %v1253_v29 = vadd.f32 0.5, %v1181_v18  ;;  %v971_v42 = vpop.f32.mrf.mxu1 }
 0x12b   : > { %v1075_v40 = vmul.f32 0.5, %v959_v25  ;;  %v1080_v12 = vmul.f32 0.5, %v980_v62  ;;  %v972_v16 = vadd.f32 %v971_v42, %v396_v5 }
 0x12c   : > { %v2308_v39 = vpop.eup %2307  ;;  %v2163_v52 = vpop.f32.mrf.mxu1 }
 0x12d   : > { %1455 = vperm.xlu1 %2193, %v1249_v37   ;;  %v1074_v37 = vmul.f32 0.5, %v956_v24  ;;  %v2310_v43 = vpop.eup %2309  ;;  %v983_v57 = vadd.f32 %v2163_v52, %v399_v49  ;;  %v1214_v0 = vmul.f32 0.5, %v2308_v39 }
 0x12e   : > { %1450 = vperm.xlu0 %2194, %v1248_v41   ;;  %v2127_v41 = vpop.f32.mrf.mxu0  ;;  %v1215_v59 = vmul.f32 0.5, %v2310_v43  ;;  %v402_v43 = vld [vmem:[%s2540_s25 + $0x210] sm:$0xff] }
 0x12f   : > { %v839_v44 = vadd.f32 %v2127_v41, %v363_v34  ;;  %2323 = vtanh.f32 %v1074_v37  ;;  %v1081_v6 = vmul.f32 0.5, %v983_v57  ;;  %v1286_v13 = vadd.f32 0.5, %v1214_v0  ;;  %v403_v41 = vld [vmem:[%s2540_s25 + $0x218] sm:$0xff] }
 0x130   : > { %2325 = vtanh.f32 %v1075_v40  ;;  %v830_v55 = vpop.f32.mrf.mxu0  ;;  %v2312_v60 = vpop.eup %2311  ;;  %v1287_v9 = vadd.f32 0.5, %v1215_v59 }
 0x131   : > { %1635 = vperm.xlu1 %2193, %v1285_v53   ;;  %v360_v53 = vld [vmem:[%s2540_s25 + $0xc0] sm:$0xff]  ;;  %v1045_v54 = vmul.f32 0.5, %v839_v44  ;;  %v2314_v1 = vpop.eup %2313  ;;  %v1185_v10 = vmul.f32 0.5, %v2312_v60 }
 0x132   : > { %1630 = vperm.xlu0 %2194, %v1284_v56   ;;  %v361_v56 = vld [vmem:[%s2540_s25 + $0xc8] sm:$0xff]  ;;  %v828_v3 = vadd.f32 %v827_v26, %v360_v53  ;;  %v2316_v11 = vpop.eup %2315  ;;  %v1184_v14 = vmul.f32 0.5, %v2314_v1  ;;  %v367_v26 = vld [vmem:[%s2540_s25 + $0xf8] sm:$0xff] }
 0x133   : > { %v831_v4 = vadd.f32 %v830_v55, %v361_v56  ;;  %2327 = vtanh.f32 %v1045_v54  ;;  %v2318_v15 = vpop.eup %2317  ;;  %v1221_v22 = vmul.f32 0.5, %v2316_v11 }
 0x134   : > { %2329 = vtanh.f32 %v1044_v61  ;;  %v2320_v23 = vpop.eup %2319  ;;  %v1042_v24 = vmul.f32 0.5, %v828_v3  ;;  %v1256_v25 = vadd.f32 0.5, %v1184_v14  ;;  %v1220_v27 = vmul.f32 0.5, %v2318_v15 }
 0x135   : > { %1445 = vperm.xlu1 %2193, %v1247_v2   ;;  %v2130_v2 = vpop.f32.mrf.mxu0  ;;  %v1043_v20 = vmul.f32 0.5, %v831_v4  ;;  %2331 = vtanh.f32 %v1081_v6  ;;  %v1293_v37 = vadd.f32 0.5, %v1221_v22  ;;  %v1183_v38 = vmul.f32 0.5, %v2320_v23  ;;  %v401_v4 = vld [vmem:[%s2540_s25 + $0x208] sm:$0xff] }
 0x136   : > { %1440 = vperm.xlu0 %2194, %v1246_v7   ;;  %v974_v7 = vpop.f32.mrf.mxu1  ;;  %2333 = vtanh.f32 %v1080_v12  ;;  %v2322_v28 = vpop.eup %2321  ;;  %v852_v39 = vadd.f32 %v2130_v2, %v366_v30  ;;  %v1292_v40 = vadd.f32 0.5, %v1220_v27 }
 0x137   : > { %v975_v18 = vadd.f32 %v974_v7, %v397_v8  ;;  %2335 = vtanh.f32 %v1043_v20  ;;  %v1182_v42 = vmul.f32 0.5, %v2322_v28  ;;  %v1255_v50 = vadd.f32 0.5, %v1183_v38  ;;  %v371_v20 = vld [vmem:[%s2540_s25 + $0x118] sm:$0xff] }
 0x138   : > { %v2166_v19 = vpop.f32.mrf.mxu1  ;;  %2337 = vtanh.f32 %v1042_v24  ;;  %v1048_v54 = vmul.f32 0.5, %v852_v39 }
 0x139   : > { %1625 = vperm.xlu1 %2193, %v1283_v17   ;;  %v843_v17 = vpop.f32.mrf.mxu0  ;;  %v996_v55 = vadd.f32 %v2166_v19, %v402_v43  ;;  %v1254_v56 = vadd.f32 0.5, %v1182_v42 }
 0x13a   : > { %1620 = vperm.xlu0 %2194, %v1282_v21   ;;  %v1257_v21 = vadd.f32 0.5, %v1185_v10  ;;  %v987_v34 = vpop.f32.mrf.mxu1  ;;  %v844_v59 = vadd.f32 %v843_v17, %v364_v46 }
 0x13b   : > { %v2131_v31 = vpop.f32.mrf.mxu0  ;;  %v1084_v3 = vmul.f32 0.5, %v996_v55 }
 0x13c   : > { %v2324_v32 = vpop.eup %2323  ;;  %v855_v36 = vadd.f32 %v2131_v31, %v367_v26  ;;  %v1046_v10 = vmul.f32 0.5, %v844_v59  ;;  %v369_v31 = vld [vmem:[%s2540_s25 + $0x108] sm:$0xff]  ;;  %v407_v59 = vld [vmem:[%s2540_s25 + $0x238] sm:$0xff] }
 0x13d   : > { %1475 = vperm.xlu1 %2193, %v1253_v29   ;;  %v1078_v29 = vmul.f32 0.5, %v972_v16  ;;  %v2326_v35 = vpop.eup %2325  ;;  %v846_v44 = vpop.f32.mrf.mxu0  ;;  %v1218_v57 = vmul.f32 0.5, %v2324_v32 }
 0x13e   : > { %1470 = vperm.xlu0 %2194, %v1252_v33   ;;  %v1079_v33 = vmul.f32 0.5, %v975_v18  ;;  %v1049_v47 = vmul.f32 0.5, %v855_v36  ;;  %v1219_v51 = vmul.f32 0.5, %v2326_v35 }
 0x13f   : > { %2339 = vtanh.f32 %v1078_v29  ;;  %v2134_v52 = vpop.f32.mrf.mxu0  ;;  %v1290_v5 = vadd.f32 0.5, %v1218_v57 }
 0x140   : > { %2341 = vtanh.f32 %v1079_v33  ;;  %v2328_v53 = vpop.eup %2327 }
 0x141   : > { %1655 = vperm.xlu1 %2193, %v1289_v45   ;;  %v2167_v45 = vpop.f32.mrf.mxu1  ;;  %2343 = vtanh.f32 %v1049_v47  ;;  %v1189_v0 = vmul.f32 0.5, %v2328_v53  ;;  %v859_v1 = vpop.f32.mrf.mxu0  ;;  %v405_v47 = vld [vmem:[%s2540_s25 + $0x228] sm:$0xff] }
 0x142   : > { %1650 = vperm.xlu0 %2194, %v1288_v48   ;;  %v365_v48 = vld [vmem:[%s2540_s25 + $0xe8] sm:$0xff]  ;;  %v999_v49 = vadd.f32 %v2167_v45, %v403_v41  ;;  %2345 = vtanh.f32 %v1048_v54 }
 0x143   : > { %v847_v60 = vadd.f32 %v846_v44, %v365_v48  ;;  %v990_v61 = vpop.f32.mrf.mxu1  ;;  %v1261_v14 = vadd.f32 0.5, %v1189_v0  ;;  %v2135_v15 = vpop.f32.mrf.mxu0 }
 0x144   : > { %v1085_v62 = vmul.f32 0.5, %v999_v49  ;;  %v991_v12 = vadd.f32 %v990_v61, %v401_v4  ;;  %v871_v28 = vadd.f32 %v2135_v15, %v371_v20 }
 0x145   : > { %1465 = vperm.xlu1 %2193, %v1251_v58   ;;  %v2330_v58 = vpop.eup %2329  ;;  %v2605_v7 = vpop.f32.mrf.mxu1  ;;  %v1047_v11 = vmul.f32 0.5, %v847_v60 }
 0x146   : > { %1460 = vperm.xlu0 %2194, %v1250_v63   ;;  %v1291_v63 = vadd.f32 0.5, %v1219_v51  ;;  %v2332_v2 = vpop.eup %2331  ;;  %v1188_v6 = vmul.f32 0.5, %v2330_v58  ;;  %2347 = vtanh.f32 %v1085_v62  ;;  %v1083_v27 = vmul.f32 0.5, %v991_v12  ;;  %v862_v30 = vpop.f32.mrf.mxu0 }
 0x147   : > { %v2334_v8 = vpop.eup %2333  ;;  %v1225_v16 = vmul.f32 0.5, %v2332_v2  ;;  %2349 = vtanh.f32 %v1084_v3  ;;  %v1003_v22 = vpop.f32.mrf.mxu1  ;;  %v863_v39 = vadd.f32 %v862_v30, %v369_v31 }
 0x148   : > { %v2336_v17 = vpop.eup %2335  ;;  %v1260_v19 = vadd.f32 0.5, %v1188_v6  ;;  %2351 = vtanh.f32 %v1047_v11 }
 0x149   : > { %1645 = vperm.xlu1 %2193, %v1287_v9   ;;  %v400_v9 = vld [vmem:[%s2540_s25 + $0x200] sm:$0xff]  ;;  %v2338_v23 = vpop.eup %2337  ;;  %v1297_v29 = vadd.f32 0.5, %v1225_v16  ;;  %v1187_v32 = vmul.f32 0.5, %v2336_v17  ;;  %2353 = vtanh.f32 %v1046_v10  ;;  %v2171_v36 = vpop.f32.mrf.mxu1  ;;  %v1051_v51 = vmul.f32 0.5, %v863_v39 }
 0x14a   : > { %1640 = vperm.xlu0 %2194, %v1286_v13   ;;  %v370_v13 = vld [vmem:[%s2540_s25 + $0x110] sm:$0xff]  ;;  %v988_v18 = vadd.f32 %v987_v34, %v400_v9  ;;  %v1186_v35 = vmul.f32 0.5, %v2338_v23  ;;  %2355 = vtanh.f32 %v1083_v27 }
 0x14b   : > { %v1259_v41 = vadd.f32 0.5, %v1187_v32  ;;  %v1006_v46 = vpop.f32.mrf.mxu1  ;;  %v1308_v23 = vld [vmem:[%s2621_s27 + $0x10] sm:$0xff] }
 0x14c   : > { %v2340_v24 = vpop.eup %2339  ;;  %v1082_v33 = vmul.f32 0.5, %v988_v18  ;;  %v1258_v45 = vadd.f32 0.5, %v1186_v35  ;;  %v1007_v53 = vadd.f32 %v1006_v46, %v405_v47  ;;  %v1309_v35 = vld [vmem:[%s2621_s27 + $0x18] sm:$0xff] }
 0x14d   : > { %1495 = vperm.xlu1 %2193, %v1257_v21   ;;  %v1224_v21 = vmul.f32 0.5, %v2334_v8  ;;  %v2342_v26 = vpop.eup %2341  ;;  %v1222_v48 = vmul.f32 0.5, %v2340_v24  ;;  %v1345_v47 = vld [vmem:[%s2621_s27 + $0x138] sm:$0xff] }
 0x14e   : > { %1490 = vperm.xlu0 %2194, %v1256_v25   ;;  %v868_v25 = vadd.f32 %v2134_v52, %v370_v13  ;;  %v1223_v42 = vmul.f32 0.5, %v2342_v26  ;;  %v2344_v43 = vpop.eup %2343  ;;  %2357 = vtanh.f32 %v1082_v33  ;;  %v406_v52 = vld [vmem:[%s2540_s25 + $0x230] sm:$0xff]  ;;  %v1087_v2 = vmul.f32 0.5, %v1007_v53 }
 0x14f   : > { %v1296_v34 = vadd.f32 0.5, %v1224_v21  ;;  %v2346_v49 = vpop.eup %2345  ;;  %v1193_v55 = vmul.f32 0.5, %v2344_v43  ;;  %v1294_v60 = vadd.f32 0.5, %v1222_v48  ;;  %v1342_v48 = vld [vmem:[%s2621_s27 + $0x120] sm:$0xff] }
 0x150   : > { %v1052_v38 = vmul.f32 0.5, %v868_v25  ;;  %v1295_v54 = vadd.f32 0.5, %v1223_v42  ;;  %v1192_v61 = vmul.f32 0.5, %v2346_v49  ;;  %v1344_v25 = vld [vmem:[%s2621_s27 + $0x130] sm:$0xff] }
 0x151   : > { %1675 = vperm.xlu1 %2193, %v1293_v37   ;;  %v368_v37 = vld [vmem:[%s2540_s25 + $0x100] sm:$0xff]  ;;  %v1265_v3 = vadd.f32 0.5, %v1193_v55 }
 0x152   : > { %1670 = vperm.xlu0 %2194, %v1292_v40   ;;  %v1053_v40 = vmul.f32 0.5, %v871_v28  ;;  %v860_v44 = vadd.f32 %v859_v1, %v368_v37  ;;  %2359 = vtanh.f32 %v1052_v38  ;;  %v1015_v1 = vadd.f32 %v2171_v36, %v407_v59  ;;  %v1306_v36 = vld [vmem:[%s2621_s27] sm:$0xff]  ;;  %v1343_v59 = vld [vmem:[%s2621_s27 + $0x128] sm:$0xff] }
 0x153   : > { %v1264_v6 = vadd.f32 0.5, %v1192_v61 }
 0x154   : > { %2361 = vtanh.f32 %v1053_v40  ;;  %v1050_v57 = vmul.f32 0.5, %v860_v44  ;;  %v1089_v10 = vmul.f32 0.5, %v1015_v1 }
 0x155   : > { %1485 = vperm.xlu1 %2193, %v1255_v50   ;;  %v404_v50 = vld [vmem:[%s2540_s25 + $0x220] sm:$0xff]  ;;  %2363 = vtanh.f32 %v1051_v51 }
 0x156   : > { %1480 = vperm.xlu0 %2194, %v1254_v56   ;;  %v2348_v56 = vpop.eup %2347  ;;  %v1004_v58 = vadd.f32 %v1003_v22, %v404_v50  ;;  %2365 = vtanh.f32 %v1050_v57 }
 0x157   : > { %v2350_v62 = vpop.eup %2349  ;;  %v1229_v4 = vmul.f32 0.5, %v2348_v56  ;;  %2367 = vtanh.f32 %v1087_v2 }
 0x158   : > { %v2352_v0 = vpop.eup %2351  ;;  %v1228_v8 = vmul.f32 0.5, %v2350_v62 }
 0x159   : > { %1665 = vperm.xlu1 %2193, %v1291_v63   ;;  %v1012_v63 = vadd.f32 %v2605_v7, %v406_v52  ;;  %v2354_v9 = vpop.eup %2353  ;;  %v1301_v11 = vadd.f32 0.5, %v1229_v4  ;;  %v1191_v12 = vmul.f32 0.5, %v2352_v0 }
 0x15a   : > { %1660 = vperm.xlu0 %2194, %v1290_v5   ;;  %v1086_v5 = vmul.f32 0.5, %v1004_v58  ;;  %v2356_v13 = vpop.eup %2355  ;;  %v1190_v15 = vmul.f32 0.5, %v2354_v9 }
 0x15b   : > { %v1088_v7 = vmul.f32 0.5, %v1012_v63  ;;  %v2358_v16 = vpop.eup %2357  ;;  %v1263_v18 = vadd.f32 0.5, %v1191_v12 }
 0x15c   : > { %2369 = vtanh.f32 %v1086_v5  ;;  %v1262_v21 = vadd.f32 0.5, %v1190_v15  ;;  %v1226_v22 = vmul.f32 0.5, %v2358_v16  ;;  %v1313_v5 = vld [vmem:[%s2621_s27 + $0x38] sm:$0xff] }
 0x15d   : > { %1515 = vperm.xlu1 %2193, %v1261_v14   ;;  %v1300_v14 = vadd.f32 0.5, %v1228_v8  ;;  %2371 = vtanh.f32 %v1089_v10 }
 0x15e   : > { %1510 = vperm.xlu0 %2194, %v1260_v19   ;;  %v1227_v19 = vmul.f32 0.5, %v2356_v13  ;;  %2373 = vtanh.f32 %v1088_v7  ;;  %v1349_v7 = vld [vmem:[%s2621_s27 + $0x158] sm:$0xff] }
 0x15f   : > { %v2360_v17 = vpop.eup %2359 }
 0x160   : > { %v1299_v26 = vadd.f32 0.5, %v1227_v19  ;;  %v1196_v30 = vmul.f32 0.5, %v2360_v17  ;;  %v1311_v19 = vld [vmem:[%s2621_s27 + $0x28] sm:$0xff] }
 0x161   : > { %1695 = vperm.xlu1 %2193, %v1297_v29   ;;  %v2362_v20 = vpop.eup %2361  ;;  %v1298_v29 = vadd.f32 0.5, %v1226_v22 }
 0x162   : > { %1690 = vperm.xlu0 %2194, %v1296_v34   ;;  %v2364_v24 = vpop.eup %2363  ;;  %v1197_v27 = vmul.f32 0.5, %v2362_v20  ;;  %v1310_v20 = vld [vmem:[%s2621_s27 + $0x20] sm:$0xff] }
 0x163   : > { %v2366_v31 = vpop.eup %2365  ;;  %v1195_v38 = vmul.f32 0.5, %v2364_v24 }
 0x164   : > { %v1269_v37 = vadd.f32 0.5, %v1197_v27  ;;  %v2368_v39 = vpop.eup %2367  ;;  %v1194_v42 = vmul.f32 0.5, %v2366_v31  ;;  %v1317_v31 = vld [vmem:[%s2621_s27 + $0x58] sm:$0xff] }
 0x165   : > { %1505 = vperm.xlu1 %2193, %v1259_v41   ;;  %v1268_v41 = vadd.f32 0.5, %v1196_v30  ;;  %v1267_v49 = vadd.f32 0.5, %v1195_v38  ;;  %v1231_v50 = vmul.f32 0.5, %v2368_v39  ;;  %v1352_v38 = vld [vmem:[%s2621_s27 + $0x170] sm:$0xff] }
 0x166   : > { %1500 = vperm.xlu0 %2194, %v1258_v45   ;;  %v1266_v53 = vadd.f32 0.5, %v1194_v42 }
 0x167   : > { %v1303_v61 = vadd.f32 0.5, %v1231_v50  ;;  %v1350_v50 = vld [vmem:[%s2621_s27 + $0x160] sm:$0xff] }
 0x169   : > { %1685 = vperm.xlu1 %2193, %v1295_v54   ;;  %v2370_v43 = vpop.eup %2369 }
 0x16a   : > { %1680 = vperm.xlu0 %2194, %v1294_v60   ;;  %v2372_v51 = vpop.eup %2371  ;;  %v1230_v54 = vmul.f32 0.5, %v2370_v43  ;;  %v1307_v60 = vld [vmem:[%s2621_s27 + $0x8] sm:$0xff] }
 0x16b   : > { %v2374_v55 = vpop.eup %2373  ;;  %v1233_v62 = vmul.f32 0.5, %v2372_v51  ;;  %v1315_v43 = vld [vmem:[%s2621_s27 + $0x48] sm:$0xff] }
 0x16c   : > { %v1302_v0 = vadd.f32 0.5, %v1230_v54  ;;  %v1232_v1 = vmul.f32 0.5, %v2374_v55  ;;  %v1321_v55 = vld [vmem:[%s2621_s27 + $0x78] sm:$0xff] }
 0x16d   : > { %1535 = vperm.xlu1 %2193, %v1265_v3   ;;  %v1305_v8 = vadd.f32 0.5, %v1233_v62  ;;  %v1356_v62 = vld [vmem:[%s2621_s27 + $0x190] sm:$0xff] }
 0x16e   : > { %1530 = vperm.xlu0 %2194, %v1264_v6   ;;  %v1312_v6 = vld [vmem:[%s2621_s27 + $0x30] sm:$0xff]  ;;  %v1304_v10 = vadd.f32 0.5, %v1232_v1 }
 0x171   : > { %1715 = vperm.xlu1 %2193, %v1301_v11  }
 0x172   : > { %1710 = vperm.xlu0 %2194, %v1300_v14   ;;  %v1348_v14 = vld [vmem:[%s2621_s27 + $0x150] sm:$0xff] }
 0x175   : > { %1525 = vperm.xlu1 %2193, %v1263_v18  }
 0x176   : > { %1520 = vperm.xlu0 %2194, %v1262_v21  }
 0x178   : > { %v1391_v28 = vpop.permute.xlu1 %1390 }
 0x179   : > { %v1571_v32 = vpop.permute.xlu0 %1570  ;;  %v1740_v33 = vmul.f32 %v1391_v28, %v1308_v23  ;;  %1705 = vperm.xlu1 %2193, %v1299_v26   ;;  %v1346_v26 = vld [vmem:[%s2621_s27 + $0x140] sm:$0xff] }
 0x17a   : > { %v1776_v34 = vmul.f32 %v1571_v32, %v1344_v25  ;;  %1700 = vperm.xlu0 %2194, %v1298_v29   ;;  %v1347_v25 = vld [vmem:[%s2621_s27 + $0x148] sm:$0xff]  ;;  %v1316_v32 = vld [vmem:[%s2621_s27 + $0x50] sm:$0xff] }
 0x17b   : > { %1813 = vst.msk [vmem:[%s2629_s30 + $0x10] sm:$0xff] %vm1810_vm1, %v1740_v33 }
 0x17c   : > { %1849 = vst.msk [vmem:[%s2629_s30 + $0x130] sm:$0xff] %vm1810_vm1, %v1776_v34  ;;  %v1396_v40 = vpop.permute.xlu1 %1395 }
 0x17d   : > { %v1741_v44 = vmul.f32 %v1396_v40, %v1309_v35  ;;  %v1381_v45 = vpop.permute.xlu0 %1380  ;;  %1555 = vperm.xlu1 %2193, %v1269_v37   ;;  %v1353_v37 = vld [vmem:[%s2621_s27 + $0x178] sm:$0xff] }
 0x17e   : > { %v1738_v46 = vmul.f32 %v1381_v45, %v1306_v36  ;;  %1550 = vperm.xlu0 %2194, %v1268_v41  }
 0x17f   : > { %1814 = vst.msk [vmem:[%s2629_s30 + $0x18] sm:$0xff] %vm1810_vm1, %v1741_v44  ;;  %v1314_v44 = vld [vmem:[%s2621_s27 + $0x40] sm:$0xff] }
 0x180   : > { %1811 = vst.msk [vmem:[%s2629_s30] sm:$0xff] %vm1810_vm1, %v1738_v46  ;;  %v1576_v52 = vpop.permute.xlu1 %1575 }
 0x181   : > { %v1777_v56 = vmul.f32 %v1576_v52, %v1345_v47  ;;  %v1561_v57 = vpop.permute.xlu0 %1560  ;;  %1545 = vperm.xlu1 %2193, %v1267_v49   ;;  %v1351_v49 = vld [vmem:[%s2621_s27 + $0x168] sm:$0xff] }
 0x182   : > { %v1774_v58 = vmul.f32 %v1561_v57, %v1342_v48  ;;  %1540 = vperm.xlu0 %2194, %v1266_v53  }
 0x183   : > { %1850 = vst.msk [vmem:[%s2629_s30 + $0x138] sm:$0xff] %vm1810_vm1, %v1777_v56  ;;  %v1320_v56 = vld [vmem:[%s2621_s27 + $0x70] sm:$0xff] }
 0x184   : > { %1847 = vst.msk [vmem:[%s2629_s30 + $0x120] sm:$0xff] %vm1810_vm1, %v1774_v58  ;;  %v1566_v63 = vpop.permute.xlu1 %1565 }
 0x185   : > { %v1775_v2 = vmul.f32 %v1566_v63, %v1343_v59  ;;  %v1386_v3 = vpop.permute.xlu0 %1385  ;;  %1725 = vperm.xlu1 %2193, %v1303_v61   ;;  %v1357_v61 = vld [vmem:[%s2621_s27 + $0x198] sm:$0xff] }
 0x186   : > { %v1739_v4 = vmul.f32 %v1386_v3, %v1307_v60  ;;  %1720 = vperm.xlu0 %2194, %v1302_v0   ;;  %v1319_v3 = vld [vmem:[%s2621_s27 + $0x68] sm:$0xff] }
 0x187   : > { %1848 = vst.msk [vmem:[%s2629_s30 + $0x128] sm:$0xff] %vm1810_vm1, %v1775_v2 }
 0x188   : > { %1812 = vst.msk [vmem:[%s2629_s30 + $0x8] sm:$0xff] %vm1810_vm1, %v1739_v4  ;;  %v1416_v9 = vpop.permute.xlu1 %1415  ;;  %v1318_v4 = vld [vmem:[%s2621_s27 + $0x60] sm:$0xff] }
 0x189   : > { %v1745_v11 = vmul.f32 %v1416_v9, %v1313_v5  ;;  %v1411_v12 = vpop.permute.xlu0 %1410  ;;  %1735 = vperm.xlu1 %2193, %v1305_v8  }
 0x18a   : > { %v1744_v13 = vmul.f32 %v1411_v12, %v1312_v6  ;;  %1730 = vperm.xlu0 %2194, %v1304_v10   ;;  %v1355_v10 = vld [vmem:[%s2621_s27 + $0x188] sm:$0xff] }
 0x18b   : > { %1818 = vst.msk [vmem:[%s2629_s30 + $0x38] sm:$0xff] %vm1810_vm1, %v1745_v11  ;;  %v1354_v11 = vld [vmem:[%s2621_s27 + $0x180] sm:$0xff] }
 0x18c   : > { %1817 = vst.msk [vmem:[%s2629_s30 + $0x30] sm:$0xff] %vm1810_vm1, %v1744_v13  ;;  %v1596_v15 = vpop.permute.xlu1 %1595 }
 0x18d   : > { %v1781_v16 = vmul.f32 %v1596_v15, %v1349_v7  ;;  %v1591_v17 = vpop.permute.xlu0 %1590  ;;  %v1325_v15 = vld [vmem:[%s2621_s27 + $0x98] sm:$0xff] }
 0x18e   : > { %v1780_v18 = vmul.f32 %v1591_v17, %v1348_v14 }
 0x18f   : > { %1854 = vst.msk [vmem:[%s2629_s30 + $0x158] sm:$0xff] %vm1810_vm1, %v1781_v16  ;;  %v1324_v16 = vld [vmem:[%s2621_s27 + $0x90] sm:$0xff] }
 0x190   : > { %1853 = vst.msk [vmem:[%s2629_s30 + $0x150] sm:$0xff] %vm1810_vm1, %v1780_v18  ;;  %v1406_v21 = vpop.permute.xlu1 %1405 }
 0x191   : > { %v1743_v22 = vmul.f32 %v1406_v21, %v1311_v19  ;;  %v1401_v23 = vpop.permute.xlu0 %1400  ;;  %v1361_v21 = vld [vmem:[%s2621_s27 + $0x1b8] sm:$0xff] }
 0x192   : > { %v1742_v24 = vmul.f32 %v1401_v23, %v1310_v20 }
 0x193   : > { %1816 = vst.msk [vmem:[%s2629_s30 + $0x28] sm:$0xff] %vm1810_vm1, %v1743_v22  ;;  %v1360_v22 = vld [vmem:[%s2621_s27 + $0x1b0] sm:$0xff] }
 0x194   : > { %1815 = vst.msk [vmem:[%s2629_s30 + $0x20] sm:$0xff] %vm1810_vm1, %v1742_v24  ;;  %v1586_v27 = vpop.permute.xlu1 %1585 }
 0x195   : > { %v1779_v28 = vmul.f32 %v1586_v27, %v1347_v25  ;;  %v1581_v29 = vpop.permute.xlu0 %1580  ;;  %v1323_v27 = vld [vmem:[%s2621_s27 + $0x88] sm:$0xff] }
 0x196   : > { %v1778_v30 = vmul.f32 %v1581_v29, %v1346_v26 }
 0x197   : > { %1852 = vst.msk [vmem:[%s2629_s30 + $0x148] sm:$0xff] %vm1810_vm1, %v1779_v28  ;;  %v1322_v28 = vld [vmem:[%s2621_s27 + $0x80] sm:$0xff] }
 0x198   : > { %1851 = vst.msk [vmem:[%s2629_s30 + $0x140] sm:$0xff] %vm1810_vm1, %v1778_v30  ;;  %v1436_v33 = vpop.permute.xlu1 %1435 }
 0x199   : > { %v1749_v34 = vmul.f32 %v1436_v33, %v1317_v31  ;;  %v1431_v35 = vpop.permute.xlu0 %1430  ;;  %v1359_v33 = vld [vmem:[%s2621_s27 + $0x1a8] sm:$0xff] }
 0x19a   : > { %v1748_v36 = vmul.f32 %v1431_v35, %v1316_v32 }
 0x19b   : > { %1822 = vst.msk [vmem:[%s2629_s30 + $0x58] sm:$0xff] %vm1810_vm1, %v1749_v34  ;;  %v1358_v34 = vld [vmem:[%s2621_s27 + $0x1a0] sm:$0xff] }
 0x19c   : > { %1821 = vst.msk [vmem:[%s2629_s30 + $0x50] sm:$0xff] %vm1810_vm1, %v1748_v36  ;;  %v1616_v39 = vpop.permute.xlu1 %1615 }
 0x19d   : > { %v1785_v40 = vmul.f32 %v1616_v39, %v1353_v37  ;;  %v1611_v41 = vpop.permute.xlu0 %1610  ;;  %v1329_v39 = vld [vmem:[%s2621_s27 + $0xb8] sm:$0xff] }
 0x19e   : > { %v1784_v42 = vmul.f32 %v1611_v41, %v1352_v38 }
 0x19f   : > { %1858 = vst.msk [vmem:[%s2629_s30 + $0x178] sm:$0xff] %vm1810_vm1, %v1785_v40  ;;  %v1328_v40 = vld [vmem:[%s2621_s27 + $0xb0] sm:$0xff] }
 0x1a0   : > { %1857 = vst.msk [vmem:[%s2629_s30 + $0x170] sm:$0xff] %vm1810_vm1, %v1784_v42  ;;  %v1426_v45 = vpop.permute.xlu1 %1425 }
 0x1a1   : > { %v1747_v46 = vmul.f32 %v1426_v45, %v1315_v43  ;;  %v1421_v47 = vpop.permute.xlu0 %1420  ;;  %v1365_v45 = vld [vmem:[%s2621_s27 + $0x1d8] sm:$0xff] }
 0x1a2   : > { %v1746_v48 = vmul.f32 %v1421_v47, %v1314_v44 }
 0x1a3   : > { %1820 = vst.msk [vmem:[%s2629_s30 + $0x48] sm:$0xff] %vm1810_vm1, %v1747_v46  ;;  %v1364_v46 = vld [vmem:[%s2621_s27 + $0x1d0] sm:$0xff] }
 0x1a4   : > { %1819 = vst.msk [vmem:[%s2629_s30 + $0x40] sm:$0xff] %vm1810_vm1, %v1746_v48  ;;  %v1606_v51 = vpop.permute.xlu1 %1605 }
 0x1a5   : > { %v1783_v52 = vmul.f32 %v1606_v51, %v1351_v49  ;;  %v1601_v53 = vpop.permute.xlu0 %1600  ;;  %v1327_v51 = vld [vmem:[%s2621_s27 + $0xa8] sm:$0xff] }
 0x1a6   : > { %v1782_v54 = vmul.f32 %v1601_v53, %v1350_v50 }
 0x1a7   : > { %1856 = vst.msk [vmem:[%s2629_s30 + $0x168] sm:$0xff] %vm1810_vm1, %v1783_v52  ;;  %v1326_v52 = vld [vmem:[%s2621_s27 + $0xa0] sm:$0xff] }
 0x1a8   : > { %1855 = vst.msk [vmem:[%s2629_s30 + $0x160] sm:$0xff] %vm1810_vm1, %v1782_v54  ;;  %v1456_v57 = vpop.permute.xlu1 %1455 }
 0x1a9   : > { %v1753_v58 = vmul.f32 %v1456_v57, %v1321_v55  ;;  %v1451_v59 = vpop.permute.xlu0 %1450  ;;  %v1363_v57 = vld [vmem:[%s2621_s27 + $0x1c8] sm:$0xff] }
 0x1aa   : > { %v1752_v60 = vmul.f32 %v1451_v59, %v1320_v56 }
 0x1ab   : > { %1826 = vst.msk [vmem:[%s2629_s30 + $0x78] sm:$0xff] %vm1810_vm1, %v1753_v58  ;;  %v1362_v58 = vld [vmem:[%s2621_s27 + $0x1c0] sm:$0xff] }
 0x1ac   : > { %1825 = vst.msk [vmem:[%s2629_s30 + $0x70] sm:$0xff] %vm1810_vm1, %v1752_v60  ;;  %v1636_v63 = vpop.permute.xlu1 %1635 }
 0x1ad   : > { %v1789_v0 = vmul.f32 %v1636_v63, %v1357_v61  ;;  %v1631_v1 = vpop.permute.xlu0 %1630  ;;  %v1333_v63 = vld [vmem:[%s2621_s27 + $0xd8] sm:$0xff] }
 0x1ae   : > { %v1788_v2 = vmul.f32 %v1631_v1, %v1356_v62 }
 0x1af   : > { %1862 = vst.msk [vmem:[%s2629_s30 + $0x198] sm:$0xff] %vm1810_vm1, %v1789_v0  ;;  %v1332_v0 = vld [vmem:[%s2621_s27 + $0xd0] sm:$0xff] }
 0x1b0   : > { %1861 = vst.msk [vmem:[%s2629_s30 + $0x190] sm:$0xff] %vm1810_vm1, %v1788_v2  ;;  %v1446_v5 = vpop.permute.xlu1 %1445 }
 0x1b1   : > { %v1751_v6 = vmul.f32 %v1446_v5, %v1319_v3  ;;  %v1441_v8 = vpop.permute.xlu0 %1440  ;;  %v1369_v5 = vld [vmem:[%s2621_s27 + $0x1f8] sm:$0xff] }
 0x1b2   : > { %v1750_v9 = vmul.f32 %v1441_v8, %v1318_v4 }
 0x1b3   : > { %1824 = vst.msk [vmem:[%s2629_s30 + $0x68] sm:$0xff] %vm1810_vm1, %v1751_v6  ;;  %v1368_v6 = vld [vmem:[%s2621_s27 + $0x1f0] sm:$0xff] }
 0x1b4   : > { %1823 = vst.msk [vmem:[%s2629_s30 + $0x60] sm:$0xff] %vm1810_vm1, %v1750_v9  ;;  %v1626_v12 = vpop.permute.xlu1 %1625 }
 0x1b5   : > { %v1787_v13 = vmul.f32 %v1626_v12, %v1355_v10  ;;  %v1621_v7 = vpop.permute.xlu0 %1620  ;;  %v1331_v12 = vld [vmem:[%s2621_s27 + $0xc8] sm:$0xff] }
 0x1b6   : > { %v1786_v14 = vmul.f32 %v1621_v7, %v1354_v11 }
 0x1b7   : > { %1860 = vst.msk [vmem:[%s2629_s30 + $0x188] sm:$0xff] %vm1810_vm1, %v1787_v13  ;;  %v1330_v13 = vld [vmem:[%s2621_s27 + $0xc0] sm:$0xff] }
 0x1b8   : > { %1859 = vst.msk [vmem:[%s2629_s30 + $0x180] sm:$0xff] %vm1810_vm1, %v1786_v14  ;;  %v1476_v17 = vpop.permute.xlu1 %1475 }
 0x1b9   : > { %v1757_v18 = vmul.f32 %v1476_v17, %v1325_v15  ;;  %v1471_v19 = vpop.permute.xlu0 %1470  ;;  %v1367_v17 = vld [vmem:[%s2621_s27 + $0x1e8] sm:$0xff] }
 0x1ba   : > { %v1756_v20 = vmul.f32 %v1471_v19, %v1324_v16 }
 0x1bb   : > { %1830 = vst.msk [vmem:[%s2629_s30 + $0x98] sm:$0xff] %vm1810_vm1, %v1757_v18  ;;  %v1366_v18 = vld [vmem:[%s2621_s27 + $0x1e0] sm:$0xff] }
 0x1bc   : > { %1829 = vst.msk [vmem:[%s2629_s30 + $0x90] sm:$0xff] %vm1810_vm1, %v1756_v20  ;;  %v1656_v23 = vpop.permute.xlu1 %1655 }
 0x1bd   : > { %v1793_v24 = vmul.f32 %v1656_v23, %v1361_v21  ;;  %v1651_v25 = vpop.permute.xlu0 %1650  ;;  %v1337_v23 = vld [vmem:[%s2621_s27 + $0xf8] sm:$0xff] }
 0x1be   : > { %v1792_v26 = vmul.f32 %v1651_v25, %v1360_v22 }
 0x1bf   : > { %1866 = vst.msk [vmem:[%s2629_s30 + $0x1b8] sm:$0xff] %vm1810_vm1, %v1793_v24  ;;  %v1336_v24 = vld [vmem:[%s2621_s27 + $0xf0] sm:$0xff] }
 0x1c0   : > { %1865 = vst.msk [vmem:[%s2629_s30 + $0x1b0] sm:$0xff] %vm1810_vm1, %v1792_v26  ;;  %v1466_v29 = vpop.permute.xlu1 %1465 }
 0x1c1   : > { %v1755_v30 = vmul.f32 %v1466_v29, %v1323_v27  ;;  %v1461_v31 = vpop.permute.xlu0 %1460  ;;  %v1373_v29 = vld [vmem:[%s2621_s27 + $0x218] sm:$0xff] }
 0x1c2   : > { %v1754_v32 = vmul.f32 %v1461_v31, %v1322_v28 }
 0x1c3   : > { %1828 = vst.msk [vmem:[%s2629_s30 + $0x88] sm:$0xff] %vm1810_vm1, %v1755_v30  ;;  %v1372_v30 = vld [vmem:[%s2621_s27 + $0x210] sm:$0xff] }
 0x1c4   : > { %1827 = vst.msk [vmem:[%s2629_s30 + $0x80] sm:$0xff] %vm1810_vm1, %v1754_v32  ;;  %v1646_v35 = vpop.permute.xlu1 %1645 }
 0x1c5   : > { %v1791_v36 = vmul.f32 %v1646_v35, %v1359_v33  ;;  %v1641_v37 = vpop.permute.xlu0 %1640  ;;  %v1335_v35 = vld [vmem:[%s2621_s27 + $0xe8] sm:$0xff] }
 0x1c6   : > { %v1790_v38 = vmul.f32 %v1641_v37, %v1358_v34 }
 0x1c7   : > { %1864 = vst.msk [vmem:[%s2629_s30 + $0x1a8] sm:$0xff] %vm1810_vm1, %v1791_v36  ;;  %v1334_v36 = vld [vmem:[%s2621_s27 + $0xe0] sm:$0xff] }
 0x1c8   : > { %1863 = vst.msk [vmem:[%s2629_s30 + $0x1a0] sm:$0xff] %vm1810_vm1, %v1790_v38  ;;  %v1496_v41 = vpop.permute.xlu1 %1495 }
 0x1c9   : > { %v1761_v42 = vmul.f32 %v1496_v41, %v1329_v39  ;;  %v1491_v43 = vpop.permute.xlu0 %1490  ;;  %v1371_v41 = vld [vmem:[%s2621_s27 + $0x208] sm:$0xff] }
 0x1ca   : > { %v1760_v44 = vmul.f32 %v1491_v43, %v1328_v40 }
 0x1cb   : > { %1834 = vst.msk [vmem:[%s2629_s30 + $0xb8] sm:$0xff] %vm1810_vm1, %v1761_v42  ;;  %v1370_v42 = vld [vmem:[%s2621_s27 + $0x200] sm:$0xff] }
 0x1cc   : > { %1833 = vst.msk [vmem:[%s2629_s30 + $0xb0] sm:$0xff] %vm1810_vm1, %v1760_v44  ;;  %v1676_v47 = vpop.permute.xlu1 %1675 }
 0x1cd   : > { %v1797_v48 = vmul.f32 %v1676_v47, %v1365_v45  ;;  %v1671_v49 = vpop.permute.xlu0 %1670  ;;  %v1341_v47 = vld [vmem:[%s2621_s27 + $0x118] sm:$0xff] }
 0x1ce   : > { %v1796_v50 = vmul.f32 %v1671_v49, %v1364_v46 }
 0x1cf   : > { %1870 = vst.msk [vmem:[%s2629_s30 + $0x1d8] sm:$0xff] %vm1810_vm1, %v1797_v48  ;;  %v1340_v48 = vld [vmem:[%s2621_s27 + $0x110] sm:$0xff] }
 0x1d0   : > { %1869 = vst.msk [vmem:[%s2629_s30 + $0x1d0] sm:$0xff] %vm1810_vm1, %v1796_v50  ;;  %v1486_v53 = vpop.permute.xlu1 %1485 }
 0x1d1   : > { %v1759_v54 = vmul.f32 %v1486_v53, %v1327_v51  ;;  %v1481_v55 = vpop.permute.xlu0 %1480  ;;  %v1339_v53 = vld [vmem:[%s2621_s27 + $0x108] sm:$0xff] }
 0x1d2   : > { %v1758_v56 = vmul.f32 %v1481_v55, %v1326_v52 }
 0x1d3   : > { %1832 = vst.msk [vmem:[%s2629_s30 + $0xa8] sm:$0xff] %vm1810_vm1, %v1759_v54  ;;  %v1338_v54 = vld [vmem:[%s2621_s27 + $0x100] sm:$0xff] }
 0x1d4   : > { %1831 = vst.msk [vmem:[%s2629_s30 + $0xa0] sm:$0xff] %vm1810_vm1, %v1758_v56  ;;  %v1666_v59 = vpop.permute.xlu1 %1665 }
 0x1d5   : > { %v1795_v60 = vmul.f32 %v1666_v59, %v1363_v57  ;;  %v1661_v61 = vpop.permute.xlu0 %1660  ;;  %v1375_v59 = vld [vmem:[%s2621_s27 + $0x228] sm:$0xff] }
 0x1d6   : > { %v1794_v62 = vmul.f32 %v1661_v61, %v1362_v58 }
 0x1d7   : > { %1868 = vst.msk [vmem:[%s2629_s30 + $0x1c8] sm:$0xff] %vm1810_vm1, %v1795_v60  ;;  %v1374_v60 = vld [vmem:[%s2621_s27 + $0x220] sm:$0xff] }
 0x1d8   : > { %1867 = vst.msk [vmem:[%s2629_s30 + $0x1c0] sm:$0xff] %vm1810_vm1, %v1794_v62  ;;  %v1516_v1 = vpop.permute.xlu1 %1515 }
 0x1d9   : > { %v1765_v2 = vmul.f32 %v1516_v1, %v1333_v63  ;;  %v1511_v3 = vpop.permute.xlu0 %1510  ;;  %v1377_v1 = vld [vmem:[%s2621_s27 + $0x238] sm:$0xff] }
 0x1da   : > { %v1764_v4 = vmul.f32 %v1511_v3, %v1332_v0 }
 0x1db   : > { %1838 = vst.msk [vmem:[%s2629_s30 + $0xd8] sm:$0xff] %vm1810_vm1, %v1765_v2  ;;  %v1376_v2 = vld [vmem:[%s2621_s27 + $0x230] sm:$0xff] }
 0x1dc   : > { %1837 = vst.msk [vmem:[%s2629_s30 + $0xd0] sm:$0xff] %vm1810_vm1, %v1764_v4  ;;  %v1696_v8 = vpop.permute.xlu1 %1695 }
 0x1dd   : > { %v1801_v9 = vmul.f32 %v1696_v8, %v1369_v5  ;;  %v1691_v10 = vpop.permute.xlu0 %1690 }
 0x1de   : > { %v1800_v11 = vmul.f32 %v1691_v10, %v1368_v6 }
 0x1df   : > { %1874 = vst.msk [vmem:[%s2629_s30 + $0x1f8] sm:$0xff] %vm1810_vm1, %v1801_v9 }
 0x1e0   : > { %1873 = vst.msk [vmem:[%s2629_s30 + $0x1f0] sm:$0xff] %vm1810_vm1, %v1800_v11  ;;  %v1506_v7 = vpop.permute.xlu1 %1505 }
 0x1e1   : > { %v1763_v14 = vmul.f32 %v1506_v7, %v1331_v12  ;;  %v1501_v15 = vpop.permute.xlu0 %1500 }
 0x1e2   : > { %v1762_v16 = vmul.f32 %v1501_v15, %v1330_v13 }
 0x1e3   : > { %1836 = vst.msk [vmem:[%s2629_s30 + $0xc8] sm:$0xff] %vm1810_vm1, %v1763_v14 }
 0x1e4   : > { %1835 = vst.msk [vmem:[%s2629_s30 + $0xc0] sm:$0xff] %vm1810_vm1, %v1762_v16  ;;  %v1686_v19 = vpop.permute.xlu1 %1685 }
 0x1e5   : > { %v1799_v20 = vmul.f32 %v1686_v19, %v1367_v17  ;;  %v1681_v21 = vpop.permute.xlu0 %1680 }
 0x1e6   : > { %v1798_v22 = vmul.f32 %v1681_v21, %v1366_v18 }
 0x1e7   : > { %1872 = vst.msk [vmem:[%s2629_s30 + $0x1e8] sm:$0xff] %vm1810_vm1, %v1799_v20 }
 0x1e8   : > { %1871 = vst.msk [vmem:[%s2629_s30 + $0x1e0] sm:$0xff] %vm1810_vm1, %v1798_v22  ;;  %v1536_v25 = vpop.permute.xlu1 %1535 }
 0x1e9   : > { %v1769_v26 = vmul.f32 %v1536_v25, %v1337_v23  ;;  %v1531_v27 = vpop.permute.xlu0 %1530 }
 0x1ea   : > { %v1768_v28 = vmul.f32 %v1531_v27, %v1336_v24 }
 0x1eb   : > { %1842 = vst.msk [vmem:[%s2629_s30 + $0xf8] sm:$0xff] %vm1810_vm1, %v1769_v26 }
 0x1ec   : > { %1841 = vst.msk [vmem:[%s2629_s30 + $0xf0] sm:$0xff] %vm1810_vm1, %v1768_v28  ;;  %v1716_v31 = vpop.permute.xlu1 %1715 }
 0x1ed   : > { %v1805_v32 = vmul.f32 %v1716_v31, %v1373_v29  ;;  %v1711_v33 = vpop.permute.xlu0 %1710 }
 0x1ee   : > { %v1804_v34 = vmul.f32 %v1711_v33, %v1372_v30 }
 0x1ef   : > { %1878 = vst.msk [vmem:[%s2629_s30 + $0x218] sm:$0xff] %vm1810_vm1, %v1805_v32 }
 0x1f0   : > { %1877 = vst.msk [vmem:[%s2629_s30 + $0x210] sm:$0xff] %vm1810_vm1, %v1804_v34  ;;  %v1526_v37 = vpop.permute.xlu1 %1525 }
 0x1f1   : > { %v1767_v38 = vmul.f32 %v1526_v37, %v1335_v35  ;;  %v1521_v39 = vpop.permute.xlu0 %1520 }
 0x1f2   : > { %v1766_v40 = vmul.f32 %v1521_v39, %v1334_v36 }
 0x1f3   : > { %1840 = vst.msk [vmem:[%s2629_s30 + $0xe8] sm:$0xff] %vm1810_vm1, %v1767_v38 }
 0x1f4   : > { %1839 = vst.msk [vmem:[%s2629_s30 + $0xe0] sm:$0xff] %vm1810_vm1, %v1766_v40  ;;  %v1706_v43 = vpop.permute.xlu1 %1705 }
 0x1f5   : > { %v1803_v44 = vmul.f32 %v1706_v43, %v1371_v41  ;;  %v1701_v45 = vpop.permute.xlu0 %1700 }
 0x1f6   : > { %v1802_v46 = vmul.f32 %v1701_v45, %v1370_v42 }
 0x1f7   : > { %1876 = vst.msk [vmem:[%s2629_s30 + $0x208] sm:$0xff] %vm1810_vm1, %v1803_v44 }
 0x1f8   : > { %1875 = vst.msk [vmem:[%s2629_s30 + $0x200] sm:$0xff] %vm1810_vm1, %v1802_v46  ;;  %v1556_v49 = vpop.permute.xlu1 %1555 }
 0x1f9   : > { %v1773_v50 = vmul.f32 %v1556_v49, %v1341_v47  ;;  %v1551_v51 = vpop.permute.xlu0 %1550 }
 0x1fa   : > { %v1772_v52 = vmul.f32 %v1551_v51, %v1340_v48 }
 0x1fb   : > { %1846 = vst.msk [vmem:[%s2629_s30 + $0x118] sm:$0xff] %vm1810_vm1, %v1773_v50 }
 0x1fc   : > { %1845 = vst.msk [vmem:[%s2629_s30 + $0x110] sm:$0xff] %vm1810_vm1, %v1772_v52  ;;  %v1546_v55 = vpop.permute.xlu1 %1545 }
 0x1fd   : > { %v1771_v56 = vmul.f32 %v1546_v55, %v1339_v53  ;;  %v1541_v57 = vpop.permute.xlu0 %1540 }
 0x1fe   : > { %v1770_v58 = vmul.f32 %v1541_v57, %v1338_v54 }
 0x1ff   : > { %1844 = vst.msk [vmem:[%s2629_s30 + $0x108] sm:$0xff] %vm1810_vm1, %v1771_v56 }
 0x200   : > { %1843 = vst.msk [vmem:[%s2629_s30 + $0x100] sm:$0xff] %vm1810_vm1, %v1770_v58  ;;  %v1726_v61 = vpop.permute.xlu1 %1725 }
 0x201   : > { %v1807_v62 = vmul.f32 %v1726_v61, %v1375_v59  ;;  %v1721_v63 = vpop.permute.xlu0 %1720 }
 0x202   : > { %v1806_v0 = vmul.f32 %v1721_v63, %v1374_v60 }
 0x203   : > { %1880 = vst.msk [vmem:[%s2629_s30 + $0x228] sm:$0xff] %vm1810_vm1, %v1807_v62 }
 0x204   : > { %1879 = vst.msk [vmem:[%s2629_s30 + $0x220] sm:$0xff] %vm1810_vm1, %v1806_v0  ;;  %v1736_v3 = vpop.permute.xlu1 %1735 }
 0x205   : > { %v1809_v4 = vmul.f32 %v1736_v3, %v1377_v1  ;;  %v1731_v5 = vpop.permute.xlu0 %1730 }
 0x206   : > { %v1808_v6 = vmul.f32 %v1731_v5, %v1376_v2 }
 0x207   : > { %1882 = vst.msk [vmem:[%s2629_s30 + $0x238] sm:$0xff] %vm1810_vm1, %v1809_v4 }
 0x208   : > { %1881 = vst.msk [vmem:[%s2629_s30 + $0x230] sm:$0xff] %vm1810_vm1, %v1808_v6 }
 0x209 PF: > { %s14_s15 = sadd.s32 1, %s2381_s15  }
 0x20a   : > { %p11_p4 = scmp.ge.s32.totalorder %s14_s15, 6  }
 0x20c   :  { %13 = sbr.rel (!%p11_p4) target bundleno = 1 (0x1), region = 72 }

</bundles_post_ra>
